<compile_context>
chip_gen: v5e
topology: v5e:2x2
jax: 0.10.0
libtpu: 0.0.40
codegen_flags: <defaults>
</compile_context>

<pallas_src>
import functools
import math

import jax
import jax.numpy as jnp
from jax import lax
from jax.experimental import pallas as pl
from jax.experimental.pallas import tpu as pltpu


def _abs_kernel(xt_ref, wlin_ref, wqh1_ref, wkvo_ref, bkvo_ref, w2_ref,
                brows_ref, o_ref, *, d_model, n_heads):
    f32 = jnp.float32
    D = d_model
    H = n_heads
    hd = D // H

    xt = xt_ref[...]                         # (B*D, S): row b*D+d = x[:, b, d]
    BD, S = xt.shape
    B = BD // D

    # ---- biases: one row per bias (sublane slices, no lane rotates) ----------
    brows = brows_ref[...]                   # (3, 5*D)
    blin = brows[0:1, 0:D]
    b_qh1 = brows[1:2, :]                    # [bq*scale | b1]
    b_o2 = brows[2:3, 0:D]                   # bo + b2

    # ---- LinearPoolingShortening, batch-folded (rows r = b*D + d) ------------
    # Padded rows of x only multiply zero weights in the reference, so they are
    # dropped from the contraction (requires zero-padding at the sequence end).
    x_short = jnp.dot(xt, wlin_ref[...], preferred_element_type=f32) + blin   # (B*D, D)

    # ---- fused q | FFN-hidden projection (shared LHS, 80 output lanes) -------
    r1 = jnp.dot(x_short, wqh1_ref[...], preferred_element_type=f32) + b_qh1  # (B*D, 5D)
    h1 = jnp.maximum(r1[:, D:], 0.0)                                          # (B*D, 4D)
    ffn = jnp.dot(h1, w2_ref[...], preferred_element_type=f32)                # (B*D, D), +b2 in b_o2

    # ---- fused K and V@Wo projections, feature-major: one (160,32)x(32,S) ----
    # rows 0:B*D            -> k_t[b*D+c, s]      = K[s, b, c]
    # rows B*D + (bH+h)*D.. -> vo_t[(bH+h)*D+e,s] = (V[s,b,head h] @ Wo[head h])[e]
    kvo = jnp.dot(wkvo_ref[...], xt, preferred_element_type=f32) + bkvo_ref[...]  # (B*D+B*H*D, S)

    # ---- scores for every (batch, head) block ---------------------------------
    # 1/sqrt(head_dim) is folded into Wq / bq at trace time.
    sc_blocks = []
    for b in range(B):
        for h in range(H):
            qh = r1[b * D:(b + 1) * D, h * hd:(h + 1) * hd]              # (D, hd)
            kh = kvo[b * D + h * hd: b * D + (h + 1) * hd, :]            # (hd, S)
            sc_blocks.append(jnp.dot(qh, kh, preferred_element_type=f32))  # (D, S)
    sc = jnp.concatenate(sc_blocks, axis=0)                              # (B*H*D, S)

    # ---- ONE softmax pipeline for all (batch, head) blocks --------------------
    # TODO(synk): attention-weights dropout omitted (inference semantics => identity).
    m = jnp.max(sc, axis=-1, keepdims=True)                              # (B*H*D, 1)
    e = jnp.exp(sc - m)
    denom = jnp.sum(e, axis=-1, keepdims=True)
    # exact reciprocal: approx=True saves nothing here (one 128-elem divide)
    # and would risk the 1e-4 tolerance.
    p = e * pl.reciprocal(denom)                                         # (B*H*D, S)

    # ---- attention output (out-proj already folded into vo) + FFN, per batch --
    for b in range(B):
        acc = ffn[b * D:(b + 1) * D, :] + b_o2                           # (D, D)
        for h in range(H):
            bh = b * H + h
            p_bh = p[bh * D:(bh + 1) * D, :]                             # (D, S)
            vo_bh = kvo[BD + bh * D: BD + (bh + 1) * D, :]               # (D, S)
            # NT dot: contract the sequence dim without materializing vo_bh.T
            acc = acc + lax.dot_general(p_bh, vo_bh, (((1,), (1,)), ((), ())),
                                        preferred_element_type=f32)      # (D, D)
        o_ref[:, b * D:(b + 1) * D] = acc.astype(o_ref.dtype)


def attention_based_shortening(x, params, *, pool_size, n_heads):
    """x: (S, B, d_model) float32, seq-first like the PyTorch module."""
    S, B, D = x.shape
    pad = (pool_size - S % pool_size) % pool_size
    Sp = S + pad
    if Sp != D * pool_size:
        raise ValueError(
            "Reference semantics require padded seq_len == d_model * pool_size "
            f"(got {Sp} vs {D * pool_size}).")
    if D % n_heads != 0:
        raise ValueError("d_model must be divisible by n_heads")

    (wlin, blin, wq, bq, wk, bk, wv, bv, wo, bo, w1, b1, w2, b2) = params
    H = n_heads
    hd = D // H
    BD = B * D
    scale = 1.0 / math.sqrt(hd)
    f32 = jnp.float32

    # x passed ONCE, feature-major: (B*D, S). Tiny XLA transpose in the wrapper
    # so the kernel needs no transposes / lane->sublane shuffles at all.
    x_t = jnp.transpose(x, (1, 2, 0)).reshape(BD, S).astype(f32)

    # --- trace-time weight folding --------------------------------------------
    # PyTorch Linear computes y = x @ W.T + b.
    wlin_t = wlin.T[:S, :]                                           # (S, D); zero-pad rows dropped
    w_qh1 = jnp.concatenate([wq.T * scale, w1.T], axis=1)            # (D, 5D): q | ffn-hidden
    w2_t = w2.T                                                      # (4D, D)

    eye_b = jnp.eye(B, dtype=f32)
    wk_bd = jnp.kron(eye_b, wk)                                      # (B*D, B*D) block-diag K proj
    # Fold the attention out-projection into the V weights, per head:
    #   W_voT[h] = Wo[:, h_rows] @ Wv[h_rows, :],  b_vo[h] = Wo[:, h_rows] @ bv[h_rows]
    w_voT = jnp.concatenate(
        [wo[:, h * hd:(h + 1) * hd] @ wv[h * hd:(h + 1) * hd, :] for h in range(H)],
        axis=0)                                                      # (H*D, D)
    b_vo = jnp.concatenate(
        [wo[:, h * hd:(h + 1) * hd] @ bv[h * hd:(h + 1) * hd] for h in range(H)],
        axis=0)                                                      # (H*D,)
    w_vo_bd = jnp.kron(eye_b, w_voT)                                 # (B*H*D, B*D)
    w_kvo = jnp.concatenate([wk_bd, w_vo_bd], axis=0)                # (B*D + B*H*D, B*D)
    b_kvo = jnp.concatenate([jnp.tile(bk, B), jnp.tile(b_vo, B)]).reshape(-1, 1)  # (.., 1)

    # Bias slab: one bias per sublane row (no unaligned lane slices in-kernel).
    b_rows = jnp.zeros((3, 5 * D), f32)
    b_rows = b_rows.at[0, :D].set(blin)
    b_rows = b_rows.at[1, :].set(jnp.concatenate([bq * scale, b1]))
    b_rows = b_rows.at[2, :D].set(bo + b2)

    kernel = functools.partial(_abs_kernel, d_model=D, n_heads=H)

    out = pl.pallas_call(
        kernel,
        out_shape=jax.ShapeDtypeStruct((D, BD), f32),
        grid=(1,),
        in_specs=[
            pl.BlockSpec(x_t.shape, lambda i: (0, 0)),
            pl.BlockSpec(wlin_t.shape, lambda i: (0, 0)),
            pl.BlockSpec(w_qh1.shape, lambda i: (0, 0)),
            pl.BlockSpec(w_kvo.shape, lambda i: (0, 0)),
            pl.BlockSpec(b_kvo.shape, lambda i: (0, 0)),
            pl.BlockSpec(w2_t.shape, lambda i: (0, 0)),
            pl.BlockSpec(b_rows.shape, lambda i: (0, 0)),
        ],
        out_specs=pl.BlockSpec((D, BD), lambda i: (0, 0)),
        compiler_params=pltpu.CompilerParams(
            dimension_semantics=("arbitrary",)),
    )(x_t, wlin_t, w_qh1, w_kvo, b_kvo, w2_t, b_rows)

    # Free reshape back to the PyTorch output layout (Lq=d_model, N=B, E=d_model).
    return out.reshape(D, B, D)


def _reference(x, params, pool_size, n_heads):
    """Pure-JAX reference mirroring the PyTorch forward exactly."""
    S, B, D = x.shape
    pad = (pool_size - S % pool_size) % pool_size
    x_pad = jnp.concatenate([x, jnp.zeros((pad, B, D), x.dtype)], axis=0) if pad else x
    (wlin, blin, wq, bq, wk, bk, wv, bv, wo, bo, w1, b1, w2, b2) = params
    short_in = jnp.transpose(x_pad, (2, 1, 0))            # (D, B, Sp)
    x_short = short_in @ wlin.T + blin                    # (D, B, D)
    q = x_short @ wq.T + bq                               # (D, B, D)
    k = x @ wk.T + bk                                     # (S, B, D)
    v = x @ wv.T + bv
    hd = D // n_heads

    def split(t):  # (L, B, D) -> (B, H, L, hd)
        L = t.shape[0]
        return jnp.transpose(t.reshape(L, B, n_heads, hd), (1, 2, 0, 3))

    qh, kh, vh = split(q), split(k), split(v)
    s = jnp.einsum('bhld,bhsd->bhls', qh, kh) / math.sqrt(hd)
    a = jax.nn.softmax(s, axis=-1)
    o = jnp.einsum('bhls,bhsd->bhld', a, vh)               # (B, H, D, hd)
    o = jnp.transpose(o, (2, 0, 1, 3)).reshape(D, B, D)
    attn = o @ wo.T + bo
    ffn = jnp.maximum(x_short @ w1.T + b1, 0.0) @ w2.T + b2
    return attn + ffn


if __name__ == "__main__":
    d_model, pool_size, n_heads = 16, 2, 4
    B, S = 2, 31   # pads to 32 == d_model * pool_size (required by the reference)

    key = jax.random.PRNGKey(0)
    keys = jax.random.split(key, 16)

    def init(k, shape):
        return jax.random.normal(k, shape, jnp.float32) * 0.1

    params = (
        init(keys[0], (d_model, d_model * pool_size)), init(keys[1], (d_model,)),      # shortening.linear
        init(keys[2], (d_model, d_model)), init(keys[3], (d_model,)),                  # attn Wq, bq
        init(keys[4], (d_model, d_model)), init(keys[5], (d_model,)),                  # attn Wk, bk
        init(keys[6], (d_model, d_model)), init(keys[7], (d_model,)),                  # attn Wv, bv
        init(keys[8], (d_model, d_model)), init(keys[9], (d_model,)),                  # attn out_proj
        init(keys[10], (4 * d_model, d_model)), init(keys[11], (4 * d_model,)),        # ffn[0]
        init(keys[12], (d_model, 4 * d_model)), init(keys[13], (d_model,)),            # ffn[2]
    )
    x = jax.random.normal(keys[14], (S, B, d_model), jnp.float32)

    out = attention_based_shortening(x, params, pool_size=pool_size, n_heads=n_heads)
    out = jax.block_until_ready(out)

    ref = _reference(x, params, pool_size, n_heads)
    assert out.shape == (d_model, B, d_model), out.shape
    err = float(jnp.max(jnp.abs(out - ref)))
    assert jnp.allclose(out, ref, atol=1e-4, rtol=1e-4), err
    print("KERNEL_OK")
</pallas_src>

<mosaic_0001>
module attributes {stable_mosaic.version = 11 : i64} {
  func.func @_abs_kernel(%arg0: i32, %arg1: memref<32x31xf32, #tpu.memory_space<vmem>>, %arg2: memref<31x16xf32, #tpu.memory_space<vmem>>, %arg3: memref<16x80xf32, #tpu.memory_space<vmem>>, %arg4: memref<160x32xf32, #tpu.memory_space<vmem>>, %arg5: memref<160x1xf32, #tpu.memory_space<vmem>>, %arg6: memref<64x16xf32, #tpu.memory_space<vmem>>, %arg7: memref<3x80xf32, #tpu.memory_space<vmem>>, %arg8: memref<16x32xf32, #tpu.memory_space<vmem>>) attributes {dimension_semantics = [#tpu.dimension_semantics<arbitrary>], iteration_bounds = array<i64: 1>, scalar_prefetch = 0 : i64, scratch_operands = 0 : i64, tpu.core_type = #tpu.core_type<tc>, window_params = [{pipeline_mode = #tpu.pipeline_mode<synchronous>, transform_indices = @transform_0, window_bounds = array<i64: 32, 31>}, {pipeline_mode = #tpu.pipeline_mode<synchronous>, transform_indices = @transform_1, window_bounds = array<i64: 31, 16>}, {pipeline_mode = #tpu.pipeline_mode<synchronous>, transform_indices = @transform_2, window_bounds = array<i64: 16, 80>}, {pipeline_mode = #tpu.pipeline_mode<synchronous>, transform_indices = @transform_3, window_bounds = array<i64: 160, 32>}, {pipeline_mode = #tpu.pipeline_mode<synchronous>, transform_indices = @transform_4, window_bounds = array<i64: 160, 1>}, {pipeline_mode = #tpu.pipeline_mode<synchronous>, transform_indices = @transform_5, window_bounds = array<i64: 64, 16>}, {pipeline_mode = #tpu.pipeline_mode<synchronous>, transform_indices = @transform_6, window_bounds = array<i64: 3, 80>}, {pipeline_mode = #tpu.pipeline_mode<synchronous>, transform_indices = @transform_7, window_bounds = array<i64: 16, 32>}]} {
    %c0 = arith.constant 0 : index
    %c0_0 = arith.constant 0 : index
    %0 = vector.load %arg1[%c0, %c0_0] : memref<32x31xf32, #tpu.memory_space<vmem>>, vector<32x31xf32>
    %c0_1 = arith.constant 0 : index
    %c0_2 = arith.constant 0 : index
    %1 = vector.load %arg7[%c0_1, %c0_2] : memref<3x80xf32, #tpu.memory_space<vmem>>, vector<3x80xf32>
    %2 = vector.extract_strided_slice %1 {offsets = [0, 0], sizes = [1, 16], strides = [1, 1]} : vector<3x80xf32> to vector<1x16xf32>
    %3 = vector.extract_strided_slice %1 {offsets = [1, 0], sizes = [1, 80], strides = [1, 1]} : vector<3x80xf32> to vector<1x80xf32>
    %4 = vector.extract_strided_slice %1 {offsets = [2, 0], sizes = [1, 16], strides = [1, 1]} : vector<3x80xf32> to vector<1x16xf32>
    %c0_3 = arith.constant 0 : index
    %c0_4 = arith.constant 0 : index
    %5 = vector.load %arg2[%c0_3, %c0_4] : memref<31x16xf32, #tpu.memory_space<vmem>>, vector<31x16xf32>
    %cst = arith.constant dense<0.000000e+00> : vector<32x16xf32>
    %6 = tpu.matmul %0, %5, %cst {dimension_numbers = #tpu.dot_dimension_numbers<[1], [0], [0], [1], [0, 0, 1, 1], [], []>} : vector<32x31xf32>, vector<31x16xf32>, vector<32x16xf32> -> vector<32x16xf32>
    %7 = vector.broadcast %2 : vector<1x16xf32> to vector<32x16xf32>
    %8 = arith.addf %6, %7 : vector<32x16xf32>
    %c0_5 = arith.constant 0 : index
    %c0_6 = arith.constant 0 : index
    %9 = vector.load %arg3[%c0_5, %c0_6] : memref<16x80xf32, #tpu.memory_space<vmem>>, vector<16x80xf32>
    %cst_7 = arith.constant dense<0.000000e+00> : vector<32x80xf32>
    %10 = tpu.matmul %8, %9, %cst_7 {dimension_numbers = #tpu.dot_dimension_numbers<[1], [0], [0], [1], [0, 0, 1, 1], [], []>} : vector<32x16xf32>, vector<16x80xf32>, vector<32x80xf32> -> vector<32x80xf32>
    %11 = vector.broadcast %3 : vector<1x80xf32> to vector<32x80xf32>
    %12 = arith.addf %10, %11 : vector<32x80xf32>
    %13 = vector.extract_strided_slice %12 {offsets = [0, 16], sizes = [32, 64], strides = [1, 1]} : vector<32x80xf32> to vector<32x64xf32>
    %cst_8 = arith.constant 0.000000e+00 : f32
    %14 = vector.broadcast %cst_8 : f32 to vector<32x64xf32>
    %15 = arith.maximumf %13, %14 : vector<32x64xf32>
    %c0_9 = arith.constant 0 : index
    %c0_10 = arith.constant 0 : index
    %16 = vector.load %arg6[%c0_9, %c0_10] : memref<64x16xf32, #tpu.memory_space<vmem>>, vector<64x16xf32>
    %cst_11 = arith.constant dense<0.000000e+00> : vector<32x16xf32>
    %17 = tpu.matmul %15, %16, %cst_11 {dimension_numbers = #tpu.dot_dimension_numbers<[1], [0], [0], [1], [0, 0, 1, 1], [], []>} : vector<32x64xf32>, vector<64x16xf32>, vector<32x16xf32> -> vector<32x16xf32>
    %c0_12 = arith.constant 0 : index
    %c0_13 = arith.constant 0 : index
    %18 = vector.load %arg4[%c0_12, %c0_13] : memref<160x32xf32, #tpu.memory_space<vmem>>, vector<160x32xf32>
    %cst_14 = arith.constant dense<0.000000e+00> : vector<160x31xf32>
    %19 = tpu.matmul %18, %0, %cst_14 {dimension_numbers = #tpu.dot_dimension_numbers<[1], [0], [0], [1], [0, 0, 1, 1], [], []>} : vector<160x32xf32>, vector<32x31xf32>, vector<160x31xf32> -> vector<160x31xf32>
    %c0_15 = arith.constant 0 : index
    %c0_16 = arith.constant 0 : index
    %20 = vector.load %arg5[%c0_15, %c0_16] : memref<160x1xf32, #tpu.memory_space<vmem>>, vector<160x1xf32>
    %21 = vector.broadcast %20 : vector<160x1xf32> to vector<160x31xf32>
    %22 = arith.addf %19, %21 : vector<160x31xf32>
    %23 = vector.extract_strided_slice %12 {offsets = [0, 0], sizes = [16, 4], strides = [1, 1]} : vector<32x80xf32> to vector<16x4xf32>
    %24 = vector.extract_strided_slice %22 {offsets = [0, 0], sizes = [4, 31], strides = [1, 1]} : vector<160x31xf32> to vector<4x31xf32>
    %cst_17 = arith.constant dense<0.000000e+00> : vector<16x31xf32>
    %25 = tpu.matmul %23, %24, %cst_17 {dimension_numbers = #tpu.dot_dimension_numbers<[1], [0], [0], [1], [0, 0, 1, 1], [], []>} : vector<16x4xf32>, vector<4x31xf32>, vector<16x31xf32> -> vector<16x31xf32>
    %26 = vector.extract_strided_slice %12 {offsets = [0, 4], sizes = [16, 4], strides = [1, 1]} : vector<32x80xf32> to vector<16x4xf32>
    %27 = vector.extract_strided_slice %22 {offsets = [4, 0], sizes = [4, 31], strides = [1, 1]} : vector<160x31xf32> to vector<4x31xf32>
    %cst_18 = arith.constant dense<0.000000e+00> : vector<16x31xf32>
    %28 = tpu.matmul %26, %27, %cst_18 {dimension_numbers = #tpu.dot_dimension_numbers<[1], [0], [0], [1], [0, 0, 1, 1], [], []>} : vector<16x4xf32>, vector<4x31xf32>, vector<16x31xf32> -> vector<16x31xf32>
    %29 = vector.extract_strided_slice %12 {offsets = [0, 8], sizes = [16, 4], strides = [1, 1]} : vector<32x80xf32> to vector<16x4xf32>
    %30 = vector.extract_strided_slice %22 {offsets = [8, 0], sizes = [4, 31], strides = [1, 1]} : vector<160x31xf32> to vector<4x31xf32>
    %cst_19 = arith.constant dense<0.000000e+00> : vector<16x31xf32>
    %31 = tpu.matmul %29, %30, %cst_19 {dimension_numbers = #tpu.dot_dimension_numbers<[1], [0], [0], [1], [0, 0, 1, 1], [], []>} : vector<16x4xf32>, vector<4x31xf32>, vector<16x31xf32> -> vector<16x31xf32>
    %32 = vector.extract_strided_slice %12 {offsets = [0, 12], sizes = [16, 4], strides = [1, 1]} : vector<32x80xf32> to vector<16x4xf32>
    %33 = vector.extract_strided_slice %22 {offsets = [12, 0], sizes = [4, 31], strides = [1, 1]} : vector<160x31xf32> to vector<4x31xf32>
    %cst_20 = arith.constant dense<0.000000e+00> : vector<16x31xf32>
    %34 = tpu.matmul %32, %33, %cst_20 {dimension_numbers = #tpu.dot_dimension_numbers<[1], [0], [0], [1], [0, 0, 1, 1], [], []>} : vector<16x4xf32>, vector<4x31xf32>, vector<16x31xf32> -> vector<16x31xf32>
    %35 = vector.extract_strided_slice %12 {offsets = [16, 0], sizes = [16, 4], strides = [1, 1]} : vector<32x80xf32> to vector<16x4xf32>
    %36 = vector.extract_strided_slice %22 {offsets = [16, 0], sizes = [4, 31], strides = [1, 1]} : vector<160x31xf32> to vector<4x31xf32>
    %cst_21 = arith.constant dense<0.000000e+00> : vector<16x31xf32>
    %37 = tpu.matmul %35, %36, %cst_21 {dimension_numbers = #tpu.dot_dimension_numbers<[1], [0], [0], [1], [0, 0, 1, 1], [], []>} : vector<16x4xf32>, vector<4x31xf32>, vector<16x31xf32> -> vector<16x31xf32>
    %38 = vector.extract_strided_slice %12 {offsets = [16, 4], sizes = [16, 4], strides = [1, 1]} : vector<32x80xf32> to vector<16x4xf32>
    %39 = vector.extract_strided_slice %22 {offsets = [20, 0], sizes = [4, 31], strides = [1, 1]} : vector<160x31xf32> to vector<4x31xf32>
    %cst_22 = arith.constant dense<0.000000e+00> : vector<16x31xf32>
    %40 = tpu.matmul %38, %39, %cst_22 {dimension_numbers = #tpu.dot_dimension_numbers<[1], [0], [0], [1], [0, 0, 1, 1], [], []>} : vector<16x4xf32>, vector<4x31xf32>, vector<16x31xf32> -> vector<16x31xf32>
    %41 = vector.extract_strided_slice %12 {offsets = [16, 8], sizes = [16, 4], strides = [1, 1]} : vector<32x80xf32> to vector<16x4xf32>
    %42 = vector.extract_strided_slice %22 {offsets = [24, 0], sizes = [4, 31], strides = [1, 1]} : vector<160x31xf32> to vector<4x31xf32>
    %cst_23 = arith.constant dense<0.000000e+00> : vector<16x31xf32>
    %43 = tpu.matmul %41, %42, %cst_23 {dimension_numbers = #tpu.dot_dimension_numbers<[1], [0], [0], [1], [0, 0, 1, 1], [], []>} : vector<16x4xf32>, vector<4x31xf32>, vector<16x31xf32> -> vector<16x31xf32>
    %44 = vector.extract_strided_slice %12 {offsets = [16, 12], sizes = [16, 4], strides = [1, 1]} : vector<32x80xf32> to vector<16x4xf32>
    %45 = vector.extract_strided_slice %22 {offsets = [28, 0], sizes = [4, 31], strides = [1, 1]} : vector<160x31xf32> to vector<4x31xf32>
    %cst_24 = arith.constant dense<0.000000e+00> : vector<16x31xf32>
    %46 = tpu.matmul %44, %45, %cst_24 {dimension_numbers = #tpu.dot_dimension_numbers<[1], [0], [0], [1], [0, 0, 1, 1], [], []>} : vector<16x4xf32>, vector<4x31xf32>, vector<16x31xf32> -> vector<16x31xf32>
    %47 = tpu.concatenate %25, %28, %31, %34, %37, %40, %43, %46 in 0 : vector<16x31xf32>, vector<16x31xf32>, vector<16x31xf32>, vector<16x31xf32>, vector<16x31xf32>, vector<16x31xf32>, vector<16x31xf32>, vector<16x31xf32> -> vector<128x31xf32>
    %cst_25 = arith.constant dense<0xFF800000> : vector<128xf32>
    %48 = vector.multi_reduction <maximumf>, %47, %cst_25 [1] : vector<128x31xf32> to vector<128xf32>
    %49 = vector.shape_cast %48 : vector<128xf32> to vector<128x1xf32>
    %50 = vector.broadcast %49 : vector<128x1xf32> to vector<128x31xf32>
    %51 = arith.subf %47, %50 : vector<128x31xf32>
    %52 = math.exp %51 : vector<128x31xf32>
    %cst_26 = arith.constant dense<0.000000e+00> : vector<128xf32>
    %53 = vector.multi_reduction <add>, %52, %cst_26 [1] : vector<128x31xf32> to vector<128xf32>
    %54 = vector.shape_cast %53 : vector<128xf32> to vector<128x1xf32>
    %55 = tpu.reciprocal %54 : vector<128x1xf32> -> vector<128x1xf32>
    %56 = vector.broadcast %55 : vector<128x1xf32> to vector<128x31xf32>
    %57 = arith.mulf %52, %56 : vector<128x31xf32>
    %58 = vector.extract_strided_slice %17 {offsets = [0, 0], sizes = [16, 16], strides = [1, 1]} : vector<32x16xf32> to vector<16x16xf32>
    %59 = vector.broadcast %4 : vector<1x16xf32> to vector<16x16xf32>
    %60 = arith.addf %58, %59 : vector<16x16xf32>
    %61 = vector.extract_strided_slice %57 {offsets = [0, 0], sizes = [16, 31], strides = [1, 1]} : vector<128x31xf32> to vector<16x31xf32>
    %62 = vector.extract_strided_slice %22 {offsets = [32, 0], sizes = [16, 31], strides = [1, 1]} : vector<160x31xf32> to vector<16x31xf32>
    %cst_27 = arith.constant dense<0.000000e+00> : vector<16x16xf32>
    %63 = tpu.matmul %61, %62, %cst_27 {dimension_numbers = #tpu.dot_dimension_numbers<[1], [1], [0], [0], [0, 0, 1, 0], [], []>} : vector<16x31xf32>, vector<16x31xf32>, vector<16x16xf32> -> vector<16x16xf32>
    %64 = arith.addf %60, %63 : vector<16x16xf32>
    %65 = vector.extract_strided_slice %57 {offsets = [16, 0], sizes = [16, 31], strides = [1, 1]} : vector<128x31xf32> to vector<16x31xf32>
    %66 = vector.extract_strided_slice %22 {offsets = [48, 0], sizes = [16, 31], strides = [1, 1]} : vector<160x31xf32> to vector<16x31xf32>
    %cst_28 = arith.constant dense<0.000000e+00> : vector<16x16xf32>
    %67 = tpu.matmul %65, %66, %cst_28 {dimension_numbers = #tpu.dot_dimension_numbers<[1], [1], [0], [0], [0, 0, 1, 0], [], []>} : vector<16x31xf32>, vector<16x31xf32>, vector<16x16xf32> -> vector<16x16xf32>
    %68 = arith.addf %64, %67 : vector<16x16xf32>
    %69 = vector.extract_strided_slice %57 {offsets = [32, 0], sizes = [16, 31], strides = [1, 1]} : vector<128x31xf32> to vector<16x31xf32>
    %70 = vector.extract_strided_slice %22 {offsets = [64, 0], sizes = [16, 31], strides = [1, 1]} : vector<160x31xf32> to vector<16x31xf32>
    %cst_29 = arith.constant dense<0.000000e+00> : vector<16x16xf32>
    %71 = tpu.matmul %69, %70, %cst_29 {dimension_numbers = #tpu.dot_dimension_numbers<[1], [1], [0], [0], [0, 0, 1, 0], [], []>} : vector<16x31xf32>, vector<16x31xf32>, vector<16x16xf32> -> vector<16x16xf32>
    %72 = arith.addf %68, %71 : vector<16x16xf32>
    %73 = vector.extract_strided_slice %57 {offsets = [48, 0], sizes = [16, 31], strides = [1, 1]} : vector<128x31xf32> to vector<16x31xf32>
    %74 = vector.extract_strided_slice %22 {offsets = [80, 0], sizes = [16, 31], strides = [1, 1]} : vector<160x31xf32> to vector<16x31xf32>
    %cst_30 = arith.constant dense<0.000000e+00> : vector<16x16xf32>
    %75 = tpu.matmul %73, %74, %cst_30 {dimension_numbers = #tpu.dot_dimension_numbers<[1], [1], [0], [0], [0, 0, 1, 0], [], []>} : vector<16x31xf32>, vector<16x31xf32>, vector<16x16xf32> -> vector<16x16xf32>
    %76 = arith.addf %72, %75 : vector<16x16xf32>
    %c0_31 = arith.constant 0 : index
    %c0_32 = arith.constant 0 : index
    %77 = vector.load %arg8[%c0_31, %c0_32] : memref<16x32xf32, #tpu.memory_space<vmem>>, vector<16x16xf32>
    tpu.vector_store %arg8[%c0_31, %c0_32], %76 {strides = array<i32>} : memref<16x32xf32, #tpu.memory_space<vmem>>, vector<16x16xf32>,
    %78 = vector.extract_strided_slice %17 {offsets = [16, 0], sizes = [16, 16], strides = [1, 1]} : vector<32x16xf32> to vector<16x16xf32>
    %79 = vector.broadcast %4 : vector<1x16xf32> to vector<16x16xf32>
    %80 = arith.addf %78, %79 : vector<16x16xf32>
    %81 = vector.extract_strided_slice %57 {offsets = [64, 0], sizes = [16, 31], strides = [1, 1]} : vector<128x31xf32> to vector<16x31xf32>
    %82 = vector.extract_strided_slice %22 {offsets = [96, 0], sizes = [16, 31], strides = [1, 1]} : vector<160x31xf32> to vector<16x31xf32>
    %cst_33 = arith.constant dense<0.000000e+00> : vector<16x16xf32>
    %83 = tpu.matmul %81, %82, %cst_33 {dimension_numbers = #tpu.dot_dimension_numbers<[1], [1], [0], [0], [0, 0, 1, 0], [], []>} : vector<16x31xf32>, vector<16x31xf32>, vector<16x16xf32> -> vector<16x16xf32>
    %84 = arith.addf %80, %83 : vector<16x16xf32>
    %85 = vector.extract_strided_slice %57 {offsets = [80, 0], sizes = [16, 31], strides = [1, 1]} : vector<128x31xf32> to vector<16x31xf32>
    %86 = vector.extract_strided_slice %22 {offsets = [112, 0], sizes = [16, 31], strides = [1, 1]} : vector<160x31xf32> to vector<16x31xf32>
    %cst_34 = arith.constant dense<0.000000e+00> : vector<16x16xf32>
    %87 = tpu.matmul %85, %86, %cst_34 {dimension_numbers = #tpu.dot_dimension_numbers<[1], [1], [0], [0], [0, 0, 1, 0], [], []>} : vector<16x31xf32>, vector<16x31xf32>, vector<16x16xf32> -> vector<16x16xf32>
    %88 = arith.addf %84, %87 : vector<16x16xf32>
    %89 = vector.extract_strided_slice %57 {offsets = [96, 0], sizes = [16, 31], strides = [1, 1]} : vector<128x31xf32> to vector<16x31xf32>
    %90 = vector.extract_strided_slice %22 {offsets = [128, 0], sizes = [16, 31], strides = [1, 1]} : vector<160x31xf32> to vector<16x31xf32>
    %cst_35 = arith.constant dense<0.000000e+00> : vector<16x16xf32>
    %91 = tpu.matmul %89, %90, %cst_35 {dimension_numbers = #tpu.dot_dimension_numbers<[1], [1], [0], [0], [0, 0, 1, 0], [], []>} : vector<16x31xf32>, vector<16x31xf32>, vector<16x16xf32> -> vector<16x16xf32>
    %92 = arith.addf %88, %91 : vector<16x16xf32>
    %93 = vector.extract_strided_slice %57 {offsets = [112, 0], sizes = [16, 31], strides = [1, 1]} : vector<128x31xf32> to vector<16x31xf32>
    %94 = vector.extract_strided_slice %22 {offsets = [144, 0], sizes = [16, 31], strides = [1, 1]} : vector<160x31xf32> to vector<16x31xf32>
    %cst_36 = arith.constant dense<0.000000e+00> : vector<16x16xf32>
    %95 = tpu.matmul %93, %94, %cst_36 {dimension_numbers = #tpu.dot_dimension_numbers<[1], [1], [0], [0], [0, 0, 1, 0], [], []>} : vector<16x31xf32>, vector<16x31xf32>, vector<16x16xf32> -> vector<16x16xf32>
    %96 = arith.addf %92, %95 : vector<16x16xf32>
    %c0_37 = arith.constant 0 : index
    %c16 = arith.constant 16 : index
    %97 = vector.load %arg8[%c0_37, %c16] : memref<16x32xf32, #tpu.memory_space<vmem>>, vector<16x16xf32>
    tpu.vector_store %arg8[%c0_37, %c16], %96 {strides = array<i32>} : memref<16x32xf32, #tpu.memory_space<vmem>>, vector<16x16xf32>,
    return
  }
  func.func @transform_0(%arg0: i32) -> (i32, i32) {
    %c0_i32 = arith.constant 0 : i32
    %c0_i32_0 = arith.constant 0 : i32
    %c0_i32_1 = arith.constant 0 : i32
    return %c0_i32, %c0_i32_0 : i32, i32
  }
  func.func @transform_1(%arg0: i32) -> (i32, i32) {
    %c0_i32 = arith.constant 0 : i32
    %c0_i32_0 = arith.constant 0 : i32
    %c0_i32_1 = arith.constant 0 : i32
    return %c0_i32, %c0_i32_0 : i32, i32
  }
  func.func @transform_2(%arg0: i32) -> (i32, i32) {
    %c0_i32 = arith.constant 0 : i32
    %c0_i32_0 = arith.constant 0 : i32
    %c0_i32_1 = arith.constant 0 : i32
    return %c0_i32, %c0_i32_0 : i32, i32
  }
  func.func @transform_3(%arg0: i32) -> (i32, i32) {
    %c0_i32 = arith.constant 0 : i32
    %c0_i32_0 = arith.constant 0 : i32
    %c0_i32_1 = arith.constant 0 : i32
    return %c0_i32, %c0_i32_0 : i32, i32
  }
  func.func @transform_4(%arg0: i32) -> (i32, i32) {
    %c0_i32 = arith.constant 0 : i32
    %c0_i32_0 = arith.constant 0 : i32
    %c0_i32_1 = arith.constant 0 : i32
    return %c0_i32, %c0_i32_0 : i32, i32
  }
  func.func @transform_5(%arg0: i32) -> (i32, i32) {
    %c0_i32 = arith.constant 0 : i32
    %c0_i32_0 = arith.constant 0 : i32
    %c0_i32_1 = arith.constant 0 : i32
    return %c0_i32, %c0_i32_0 : i32, i32
  }
  func.func @transform_6(%arg0: i32) -> (i32, i32) {
    %c0_i32 = arith.constant 0 : i32
    %c0_i32_0 = arith.constant 0 : i32
    %c0_i32_1 = arith.constant 0 : i32
    return %c0_i32, %c0_i32_0 : i32, i32
  }
  func.func @transform_7(%arg0: i32) -> (i32, i32) {
    %c0_i32 = arith.constant 0 : i32
    %c0_i32_0 = arith.constant 0 : i32
    %c0_i32_1 = arith.constant 0 : i32
    return %c0_i32, %c0_i32_0 : i32, i32
  }
}

</mosaic_0001>

<bundles_post_ra>
// kernel: tpu_custom_call.1
= control target key start
LH: loop header
LB: loop body
LE: loop exit
PB: predicated region body
PF: predicated region fallthrough
CT: control target
= control target key end

     0   :  { %vm50_vm0 = vcmask 1046528   ;;  %s2378_s0 = inlined_call_operand.vmem [shape: f32[32,31], index: 0, kind: input, shape index: {}]   ;;  %s2379_s1 = inlined_call_operand.vmem [shape: f32[31,16], index: 1, kind: input, shape index: {}]   ;;  %s2380_s2 = inlined_call_operand.vmem [shape: f32[16,80], index: 2, kind: input, shape index: {}]   ;;  %s2381_s3 = inlined_call_operand.vmem [shape: f32[160,32], index: 3, kind: input, shape index: {}]   ;;  %s2382_s4 = inlined_call_operand.vmem [shape: f32[160,1], index: 4, kind: input, shape index: {}]   ;;  %s2383_s5 = inlined_call_operand.vmem [shape: f32[64,16], index: 5, kind: input, shape index: {}]   ;;  %s2384_s6 = inlined_call_operand.vmem [shape: f32[3,80], index: 6, kind: input, shape index: {}]   ;;  %s2385_s7 = inlined_call_operand.hbm [shape: f32[16,32], index: 7, kind: output, shape index: {}]  }
   0x1   :  { %v35_v0 = vld [vmem:[%s2379_s1 + $0x18] sm:$0x7f]  ;;  %v34_v1 = vld [vmem:[%s2379_s1 + $0x10] sm:$0xff]  ;;  %v33_v2 = vld [vmem:[%s2379_s1 + $0x8] sm:$0xff] }
   0x2   :  { %1454 = vmatpush.msk.msra.mxu0 %vm50_vm0, %v35_v0  ;;  %v30_v3 = vld [vmem:[%s2378_s0 + $0x18] sm:$0xff] }
   0x3   :  { %1543 = vmatpush.msra.mxu3 %v30_v3 }
   0x4   :  { %67 = vmatpush.msra.mxu0 %v34_v1 }
   0x5   :  { %12 = vsyncpa [#allocation3], 0  ;;  %v32_v4 = vld [vmem:[%s2379_s1] sm:$0xff]  ;;  %v29_v5 = vld [vmem:[%s2378_s0 + $0x10] sm:$0xff]  ;;  %vm37_vm1 = vcmask 252928   ;;  %vm330_vm2 = vcmask 261120  }
   0x6   :  { %68 = vmatpush.msra.mxu0 %v33_v2  ;;  %v27_v6 = vld [vmem:[%s2378_s0] sm:$0xff]  ;;  %1544 = vmatpush.msra.mxu3 %v29_v5  ;;  %v28_v7 = vld [vmem:[%s2378_s0 + $0x8] sm:$0xff]  ;;  %v193_v11 = vld [vmem:[%s2381_s3 + $0x18] sm:$0xff]  ;;  %vm86_vm3 = vcmask 130048   ;;  %v1651_v27 = vmov 0   ;;  %s1652_s15 = smov 112  }
   0x7   :  { %v84_v8 = vld [vmem:[%s2380_s2 + $0x8] sm:$0xff]  ;;  %v83_v9 = vld [vmem:[%s2380_s2] sm:$0xff]  ;;  %v196_v23 = vld [vmem:[%s2381_s3 + $0x30] sm:$0xff]  ;;  %1557 = vset.pattern.permute.xlu1 %v1651_v27  ;;  %1559 = vset.pattern.permute.xlu0 %v1651_v27  ;;  %s1653_s18 = smov 124   ;;  %s1654_s24 = smov 116   ;;  %vm152_vm4 = vcmask 523264  }
   0x8   :  { %69 = vmatpush.msra.mxu0 %v32_v4  ;;  %1545 = vmatpush.msra.mxu3 %v28_v7  ;;  %v31_v10 = vld [vmem:[%s2384_s6] sm:$0x7]  ;;  %v195_v22 = vld [vmem:[%s2381_s3 + $0x28] sm:$0xff]  ;;  %v197_v25 = vld [vmem:[%s2381_s3 + $0x38] sm:$0xff]  ;;  %s1655_s8 = smov 120   ;;  %vm475_vm5 = vcmask 1043456  }
   0x9   :  { %1455 = vmatmul.msk.f32.vlgmr.msra.gmra.mxu0 %vm37_vm1, %v27_v6  ;;  %113 = vmatpush.msra.mxu1 %v84_v8  ;;  %v36_v12 = vperm.slane %v31_v10, 0  ;;  %v194_v21 = vld [vmem:[%s2381_s3 + $0x20] sm:$0xff]  ;;  %v191_v26 = vld [vmem:[%s2381_s3 + $0x8] sm:$0xff]  ;;  %v85_v28 = vperm.slane %v31_v10, 1  ;;  %v192_v30 = vld [vmem:[%s2381_s3 + $0x10] sm:$0xff]  ;;  %vm468_vm6 = vcmask 31744  }
   0xa   :  { %1546 = vmatpush.msra.mxu3 %v27_v6  ;;  %403 = vmatpush.msrb.mxu0 %v30_v3  ;;  %v190_v24 = vld [vmem:[%s2381_s3] sm:$0xff]  ;;  %v199_v34 = vld [vmem:[%s2381_s3 + $0x48] sm:$0xff]  ;;  %v200_v38 = vld [vmem:[%s2381_s3 + $0x50] sm:$0xff]  ;;  %s1657_s1 = smov [#allocation2]   ;;  %s1658_s20 = smov 128  }
   0xb   :  { %114 = vmatpush.msra.mxu1 %v83_v9  ;;  %1470 = vmatmul.msk.f32.vlgmr.msra.gmra.mxu3 %vm330_vm2, %v193_v11  ;;  %v198_v29 = vld [vmem:[%s2381_s3 + $0x40] sm:$0xff]  ;;  %v201_v42 = vld [vmem:[%s2381_s3 + $0x58] sm:$0xff]  ;;  %v211_v48 = vld [vmem:[%s2382_s4 + $0x8] sm:$0xff]  ;;  %s1440_s17 = sshll.u32 %s1657_s1, 4  ;;  %s1659_s21 = smov 8   ;;  %s1441_s17 = int_to_ptr.vmem [resolvable:$true] %s1440_s17 }
   0xc   :  { %404 = vmatpush.msrb.mxu0 %v29_v5  ;;  %1558 = vset.pattern.permute.xlu2 %v1651_v27  ;;  %v210_v45 = vld [vmem:[%s2382_s4] sm:$0xff]  ;;  %v203_v49 = vld [vmem:[%s2381_s3 + $0x68] sm:$0xff]  ;;  %v212_v50 = vld [vmem:[%s2382_s4 + $0x10] sm:$0xff] }
   0xd   :  { %v202_v47 = vld [vmem:[%s2381_s3 + $0x60] sm:$0xff]  ;;  %v213_v51 = vld [vmem:[%s2382_s4 + $0x18] sm:$0xff]  ;;  %v138_v54 = vld [vmem:[%s2383_s5 + $0x30] sm:$0xff] }
   0xe   :  { %405 = vmatpush.msrb.mxu0 %v28_v7  ;;  %v214_v52 = vld [vmem:[%s2382_s4 + $0x20] sm:$0xff]  ;;  %v139_v53 = vld [vmem:[%s2383_s5 + $0x38] sm:$0xff]  ;;  %v137_v55 = vld [vmem:[%s2383_s5 + $0x28] sm:$0xff] }
   0xf   :  { %169 = vmatpush.msra.mxu2 %v139_v53  ;;  %v136_v56 = vld [vmem:[%s2383_s5 + $0x20] sm:$0xff]  ;;  %v216_v57 = vld [vmem:[%s2382_s4 + $0x30] sm:$0xff]  ;;  %v135_v58 = vld [vmem:[%s2383_s5 + $0x18] sm:$0xff] }
  0x10   :  { %406 = vmatpush.msrb.mxu0 %v27_v6  ;;  %v134_v59 = vld [vmem:[%s2383_s5 + $0x10] sm:$0xff]  ;;  %v133_v60 = vld [vmem:[%s2383_s5 + $0x8] sm:$0xff]  ;;  %v132_v61 = vld [vmem:[%s2383_s5] sm:$0xff] }
  0x11   :  { %1456 = vmatmul.msk.f32.gmra.mxu0 %vm37_vm1, %v28_v7  ;;  %170 = vmatpush.msra.mxu2 %v138_v54  ;;  %v217_v62 = vld [vmem:[%s2382_s4 + $0x38] sm:$0xff]  ;;  %v215_v63 = vld [vmem:[%s2382_s4 + $0x28] sm:$0xff]  ;;  %v220_v0 = vld [vmem:[%s2382_s4 + $0x50] sm:$0xff] }
  0x12   :  { %v218_v1 = vld [vmem:[%s2382_s4 + $0x40] sm:$0xff]  ;;  %v221_v2 = vld [vmem:[%s2382_s4 + $0x58] sm:$0xff] }
  0x13   :  { %1471 = vmatmul.msk.f32.gmra.mxu3 %vm330_vm2, %v194_v21  ;;  %171 = vmatpush.msra.mxu2 %v137_v55  ;;  %v222_v4 = vld [vmem:[%s2382_s4 + $0x60] sm:$0xff] }
  0x15   :  { %172 = vmatpush.msra.mxu2 %v136_v56 }
  0x17   :  { %173 = vmatpush.msra.mxu2 %v135_v58 }
  0x19   :  { %1457 = vmatmul.msk.f32.gmra.mxu0 %vm37_vm1, %v29_v5  ;;  %174 = vmatpush.msra.mxu2 %v134_v59  ;;  %v219_v5 = vld [vmem:[%s2382_s4 + $0x48] sm:$0xff] }
  0x1b   :  { %1472 = vmatmul.msk.f32.gmra.mxu3 %vm330_vm2, %v195_v22  ;;  %175 = vmatpush.msra.mxu2 %v133_v60 }
  0x1d   :  { %176 = vmatpush.msra.mxu2 %v132_v61 }
  0x21   :  { %1458 = vmatmul.msk.f32.gmra.mxu0 %vm37_vm1, %v30_v3  ;;  %v223_v3 = vld [vmem:[%s2382_s4 + $0x68] sm:$0xff] }
  0x23   :  { %1473 = vmatmul.msk.f32.gmra.mxu3 %vm330_vm2, %v196_v23 }
  0x29   :  { %1467 = vmatmul.msk.f32.vlgmr.msrb.gmra.mxu0 %vm330_vm2, %v190_v24 }
  0x2b   :  { %1474 = vmatmul.msk.f32.gmra.mxu3 %vm330_vm2, %v197_v25 }
  0x31   :  { %1468 = vmatmul.msk.f32.gmra.mxu0 %vm330_vm2, %v191_v26 }
  0x33   :  { %1475 = vmatmul.msk.f32.gmra.mxu3 %vm330_vm2, %v198_v29 }
  0x39   :  { %1469 = vmatmul.msk.f32.gmra.mxu0 %vm330_vm2, %v192_v30 }
  0x3b   :  { %1476 = vmatmul.msk.f32.gmra.mxu3 %vm330_vm2, %v199_v34 }
  0x43   :  { %1477 = vmatmul.msk.f32.gmra.mxu3 %vm330_vm2, %v200_v38 }
  0x4b   :  { %1478 = vmatmul.msk.f32.gmra.mxu3 %vm330_vm2, %v201_v42 }
  0x53   :  { %1479 = vmatmul.msk.f32.gmra.mxu3 %vm330_vm2, %v202_v47 }
  0x5b   :  { %1480 = vmatmul.msk.f32.gmra.mxu3 %vm330_vm2, %v203_v49 }
  0x86   :  { %v71_v13 = vpop.f32.mrf.mxu0 }
  0x87   :  { %v72_v14 = vadd.f32 %v71_v13, %v36_v12 }
  0x89   :  { %1459 = vmatmul.msk.f32.vlgmr.msra.gmra.mxu1 %vm86_vm3, %v72_v14 }
  0x8e   :  { %v74_v15 = vpop.f32.mrf.mxu0  ;;  %v417_v6 = vpop.f32.mrf.mxu3 }
  0x8f   :  { %v75_v16 = vadd.f32 %v74_v15, %v36_v12 }
  0x91   :  { %1460 = vmatmul.msk.f32.gmra.mxu1 %vm86_vm3, %v75_v16 }
  0x96   :  { %v77_v17 = vpop.f32.mrf.mxu0  ;;  %v1895_v7 = vpop.f32.mrf.mxu3 }
  0x97   :  { %v78_v18 = vadd.f32 %v77_v17, %v36_v12 }
  0x99   :  { %1461 = vmatmul.msk.f32.gmra.mxu1 %vm86_vm3, %v78_v18 }
  0x9e   :  { %v80_v19 = vpop.f32.mrf.mxu0  ;;  %v423_v8 = vpop.f32.mrf.mxu3 }
  0x9f   :  { %v81_v20 = vadd.f32 %v80_v19, %v36_v12 }
  0xa1   :  { %1462 = vmatmul.msk.f32.gmra.mxu1 %vm86_vm3, %v81_v20 }
  0xa6   :  { %v1898_v11 = vpop.f32.mrf.mxu3  ;;  %v408_v18 = vpop.f32.mrf.mxu0 }
  0xae   :  { %v1902_v17 = vpop.f32.mrf.mxu3  ;;  %v411_v25 = vpop.f32.mrf.mxu0 }
  0xb6   :  { %v1906_v24 = vpop.f32.mrf.mxu3 }
 0x106   :  { %v116_v31 = vpop.f32.mrf.mxu1 }
 0x107   :  { %v1776_v32 = vadd.f32 %v116_v31, %v85_v28  ;;  %v435_v31 = vpop.f32.mrf.mxu3 }
 0x109   :  { %v128_v33 = vmax.f32 %v1776_v32, 0.0 }
 0x10b   :  { %144 = vrot.lane.b32.xlu0 %v128_v33, %s1652_s15 }
 0x10e   :  { %v119_v35 = vpop.f32.mrf.mxu1 }
 0x10f   :  { %v1784_v36 = vadd.f32 %v119_v35, %v85_v28 }
 0x111   :  { %v129_v37 = vmax.f32 %v1784_v36, 0.0 }
 0x113   :  { %146 = vrot.lane.b32.xlu0 %v129_v37, %s1652_s15 }
 0x116   :  { %v122_v39 = vpop.f32.mrf.mxu1 }
 0x117   :  { %v1791_v40 = vadd.f32 %v122_v39, %v85_v28 }
 0x119   :  { %v130_v41 = vmax.f32 %v1791_v40, 0.0 }
 0x11b   :  { %148 = vrot.lane.b32.xlu1 %v130_v41, %s1652_s15  ;;  %502 = vrot.lane.b32.xlu0 %v1776_v32, %s1653_s18 }
 0x11e   :  { %v125_v43 = vpop.f32.mrf.mxu1 }
 0x11f   :  { %v1800_v44 = vadd.f32 %v125_v43, %v85_v28 }
 0x121   :  { %v131_v46 = vmax.f32 %v1800_v44, 0.0 }
 0x123   :  { %150 = vrot.lane.b32.xlu2 %v131_v46, %s1652_s15  ;;  %232 = vperm.xlu1 %1557, %v210_v45  }
 0x124   :  { %570 = vrot.lane.b32.xlu0 %v1776_v32, %s1654_s24 }
 0x12b   :  { %237 = vperm.xlu1 %1557, %v211_v48   ;;  %504 = vrot.lane.b32.xlu2 %v1784_v36, %s1653_s18 }
 0x12c   :  { %572 = vrot.lane.b32.xlu0 %v1784_v36, %s1654_s24 }
 0x133   :  { %242 = vperm.xlu1 %1557, %v212_v50   ;;  %536 = vrot.lane.b32.xlu2 %v1776_v32, %s1655_s8 }
 0x134   :  { %670 = vrot.lane.b32.xlu0 %v1791_v40, %s1655_s8 }
 0x13b   :  { %247 = vperm.xlu1 %1557, %v213_v51   ;;  %538 = vrot.lane.b32.xlu2 %v1784_v36, %s1655_s8 }
 0x13c   :  { %704 = vrot.lane.b32.xlu0 %v1791_v40, %s1654_s24 }
 0x143   :  { %638 = vrot.lane.b32.xlu1 %v1800_v44, %s1653_s18  ;;  %636 = vrot.lane.b32.xlu2 %v1791_v40, %s1653_s18  ;;  %s1442_s18 = sshll.u32 %s2385_s7, 4  ;;  %s1443_s18 = int_to_ptr.hbm [resolvable:$true] %s1442_s18 }
 0x144   :  { %252 = vperm.xlu0 %1559, %v214_v52  }
 0x14b   :  { %706 = vrot.lane.b32.xlu1 %v1800_v44, %s1654_s24  ;;  %672 = vrot.lane.b32.xlu2 %v1800_v44, %s1655_s8 }
 0x14c   :  { %262 = vperm.xlu0 %1559, %v216_v57  }
 0x153   :  { %267 = vperm.xlu1 %1557, %v217_v62   ;;  %257 = vperm.xlu2 %1558, %v215_v63  }
 0x154   :  { %282 = vperm.xlu0 %1559, %v220_v0  }
 0x15b   :  { %272 = vperm.xlu1 %1557, %v218_v1   ;;  %287 = vperm.xlu2 %1558, %v221_v2  }
 0x15c   :  { %297 = vperm.xlu0 %1559, %v223_v3  }
 0x163   :  { %292 = vperm.xlu1 %1557, %v222_v4   ;;  %277 = vperm.xlu2 %1558, %v219_v5  }
 0x17d   :  { %v151_v9 = vpop.permute.xlu2 %150  ;;  %v145_v10 = vpop.permute.xlu0 %144 }
 0x17e   :  { %1463 = vmatmul.msk.f32.vlgmr.msra.gmra.mxu2 %vm152_vm4, %v145_v10 }
 0x185   :  { %v505_v12 = vpop.permute.xlu2 %504  ;;  %v147_v13 = vpop.permute.xlu0 %146 }
 0x186   :  { %1464 = vmatmul.msk.f32.gmra.mxu2 %vm152_vm4, %v147_v13 }
 0x18d   :  { %v149_v14 = vpop.permute.xlu1 %148  ;;  %v537_v15 = vpop.permute.xlu2 %536 }
 0x18e   :  { %v503_v16 = vpop.permute.xlu0 %502  ;;  %1465 = vmatmul.msk.f32.gmra.mxu2 %vm152_vm4, %v149_v14 }
 0x195   :  { %v233_v19 = vpop.permute.xlu1 %232  ;;  %v539_v20 = vpop.permute.xlu2 %538 }
 0x196   :  { %v409_v21 = vadd.f32 %v408_v18, %v233_v19  ;;  %v571_v22 = vpop.permute.xlu0 %570  ;;  %1466 = vmatmul.msk.f32.gmra.mxu2 %vm152_vm4, %v151_v9 }
 0x198   :  { %v506_v23 = vrot.slane %v409_v21, 4  ;;  %1487 = vmatpush.msk.msrb.mxu1 %vm475_vm5, %v409_v21 }
 0x199   :  { %1488 = vmatmul.msk.f32.vlgmr.msrb.gmra.mxu1 %vm468_vm6, %v1776_v32  ;;  %v414_v32 = vpop.f32.mrf.mxu0 }
 0x19a   :  { %1490 = vmatpush.msk.msra.mxu0 %vm475_vm5, %v506_v23  ;;  %1547 = vmatpush.msk.msrb.mxu2 %vm475_vm5, %v506_v23 }
 0x19b   :  { %1491 = vmatmul.msk.f32.vlgmr.msra.gmra.mxu0 %vm468_vm6, %v503_v16 }
 0x19d   :  { %v238_v26 = vpop.permute.xlu1 %237  ;;  %v637_v27 = vpop.permute.xlu2 %636 }
 0x19e   :  { %v412_v28 = vadd.f32 %v411_v25, %v238_v26  ;;  %v573_v29 = vpop.permute.xlu0 %572  ;;  %1492 = vmatmul.msk.f32.vlgmr.msrb.gmra.mxu2 %vm468_vm6, %v505_v12  ;;  %v204_v25 = vld [vmem:[%s2381_s3 + $0x70] sm:$0xff]  ;;  %v205_v26 = vld [vmem:[%s2381_s3 + $0x78] sm:$0xff] }
 0x19f   :  { %1481 = vmatmul.msk.f32.gmra.mxu3 %vm330_vm2, %v204_v25 }
 0x1a0   :  { %v574_v30 = vrot.slane %v412_v28, 4  ;;  %1493 = vmatpush.msk.msra.mxu2 %vm475_vm5, %v412_v28  ;;  %v206_v28 = vld [vmem:[%s2381_s3 + $0x80] sm:$0xff] }
 0x1a1   :  { %1489 = vmatmul.msk.f32.gmra.mxu1 %vm468_vm6, %v1784_v36  ;;  %v438_v36 = vpop.f32.mrf.mxu3 }
 0x1a2   :  { %1496 = vmatpush.msk.msra.mxu1 %vm475_vm5, %v574_v30  ;;  %v207_v30 = vld [vmem:[%s2381_s3 + $0x88] sm:$0xff] }
 0x1a5   :  { %v243_v33 = vpop.permute.xlu1 %242  ;;  %v673_v34 = vpop.permute.xlu2 %672 }
 0x1a6   :  { %v415_v35 = vadd.f32 %v414_v32, %v243_v33  ;;  %v671_v37 = vpop.permute.xlu0 %670  ;;  %1494 = vmatmul.msk.f32.vlgmr.msra.gmra.mxu2 %vm468_vm6, %v537_v15 }
 0x1a7   :  { %1482 = vmatmul.msk.f32.gmra.mxu3 %vm330_vm2, %v205_v26 }
 0x1a8   :  { %v640_v38 = vrot.slane %v415_v35, 4  ;;  %1499 = vmatpush.msk.msrb.mxu0 %vm475_vm5, %v415_v35 }
 0x1a9   :  { %1497 = vmatmul.msk.f32.vlgmr.msra.gmra.mxu1 %vm468_vm6, %v571_v22  ;;  %1500 = vmatmul.msk.f32.vlgmr.msrb.gmra.mxu0 %vm468_vm6, %v1791_v40  ;;  %v441_v49 = vpop.f32.mrf.mxu3 }
 0x1aa   :  { %1502 = vmatpush.msk.msrb.mxu2 %vm475_vm5, %v640_v38 }
 0x1ad   :  { %v248_v39 = vpop.permute.xlu1 %247  ;;  %v258_v41 = vpop.permute.xlu2 %257 }
 0x1ae   :  { %v418_v42 = vadd.f32 %v417_v6, %v248_v39  ;;  %v705_v43 = vpop.permute.xlu0 %704  ;;  %1495 = vmatmul.msk.f32.gmra.mxu2 %vm468_vm6, %v539_v20  ;;  %v424_v45 = vadd.f32 %v423_v8, %v258_v41 }
 0x1af   :  { %1483 = vmatmul.msk.f32.gmra.mxu3 %vm330_vm2, %v206_v28 }
 0x1b0   :  { %v708_v46 = vrot.slane %v418_v42, 4  ;;  %1505 = vmatpush.msk.msrb.mxu1 %vm475_vm5, %v418_v42  ;;  %1511 = vmatpush.xpose.msk.msra.mxu2 %vm37_vm1, %v424_v45 }
 0x1b1   :  { %1498 = vmatmul.msk.f32.gmra.mxu1 %vm468_vm6, %v573_v29  ;;  %1501 = vmatmul.msk.f32.gmra.mxu0 %vm468_vm6, %v1800_v44  ;;  %v444_v55 = vpop.f32.mrf.mxu3 }
 0x1b2   :  { %1508 = vmatpush.msk.msra.mxu0 %vm475_vm5, %v708_v46 }
 0x1b5   :  { %v639_v40 = vpop.permute.xlu1 %638  ;;  %v288_v47 = vpop.permute.xlu2 %287 }
 0x1b6   :  { %1503 = vmatmul.msk.f32.vlgmr.msrb.gmra.mxu2 %vm468_vm6, %v637_v27  ;;  %v253_v48 = vpop.permute.xlu0 %252  ;;  %v442_v51 = vadd.f32 %v441_v49, %v288_v47 }
 0x1b7   :  { %v421_v50 = vadd.f32 %v1895_v7, %v253_v48  ;;  %1484 = vmatmul.msk.f32.gmra.mxu3 %vm330_vm2, %v207_v30 }
 0x1b9   :  { %1506 = vmatmul.msk.f32.vlgmr.msrb.gmra.mxu1 %vm468_vm6, %v671_v37  ;;  %1509 = vmatmul.msk.f32.vlgmr.msra.gmra.mxu0 %vm468_vm6, %v705_v43  ;;  %v447_v61 = vpop.f32.mrf.mxu3 }
 0x1ba   :  { %1512 = vmatpush.xpose.msk.msra.mxu2 %vm37_vm1, %v421_v50 }
 0x1bd   :  { %v707_v44 = vpop.permute.xlu1 %706  ;;  %v278_v52 = vpop.permute.xlu2 %277 }
 0x1be   :  { %1523 = vmatpush.xpose.msk.msrb.mxu2 %vm37_vm1, %v442_v51  ;;  %v263_v53 = vpop.permute.xlu0 %262  ;;  %v436_v54 = vadd.f32 %v435_v31, %v278_v52 }
 0x1bf   :  { %1504 = vmatmul.msk.f32.gmra.mxu2 %vm468_vm6, %v639_v40  ;;  %v427_v60 = vadd.f32 %v1898_v11, %v263_v53 }
 0x1c0   :  { %1519 = vmatpush.xpose.msk.msrb.mxu0 %vm37_vm1, %v436_v54 }
 0x1c1   :  { %1507 = vmatmul.msk.f32.gmra.mxu1 %vm468_vm6, %v673_v34  ;;  %1510 = vmatmul.msk.f32.gmra.mxu0 %vm468_vm6, %v707_v44 }
 0x1c5   :  { %v268_v56 = vpop.permute.xlu1 %267 }
 0x1c6   :  { %v430_v57 = vadd.f32 %v1902_v17, %v268_v56  ;;  %v283_v58 = vpop.permute.xlu0 %282 }
 0x1c7   :  { %v439_v59 = vadd.f32 %v438_v36, %v283_v58 }
 0x1c8   :  { %1515 = vmatpush.xpose.msk.msra.mxu1 %vm37_vm1, %v430_v57 }
 0x1c9   :  { %1524 = vmatpush.xpose.msk.msrb.mxu2 %vm37_vm1, %v439_v59 }
 0x1cc   :  { %1516 = vmatpush.xpose.msk.msra.mxu1 %vm37_vm1, %v427_v60 }
 0x1cd   :  { %v273_v62 = vpop.permute.xlu1 %272 }
 0x1ce   :  { %v433_v63 = vadd.f32 %v1906_v24, %v273_v62  ;;  %v298_v0 = vpop.permute.xlu0 %297 }
 0x1cf   :  { %v448_v1 = vadd.f32 %v447_v61, %v298_v0 }
 0x1d0   :  { %1520 = vmatpush.xpose.msk.msrb.mxu0 %vm37_vm1, %v433_v63 }
 0x1d1   :  { %1527 = vmatpush.xpose.msk.msrb.mxu1 %vm37_vm1, %v448_v1 }
 0x1d5   :  { %v293_v2 = vpop.permute.xlu1 %292 }
 0x1d6   :  { %v445_v3 = vadd.f32 %v444_v55, %v293_v2 }
 0x1d8   :  { %1528 = vmatpush.xpose.msk.msrb.mxu1 %vm37_vm1, %v445_v3 }
 0x201   :  { %v1975_v24 = vpop.f32.mrf.mxu2 }
 0x209   :  { %v1984_v27 = vpop.f32.mrf.mxu2 }
 0x211   :  { %v1991_v29 = vpop.f32.mrf.mxu2 }
 0x216   :  { %v496_v4 = vpop.f32.mrf.mxu1 }
 0x217   :  { %v738_v5 = vsel %vm37_vm1, %v496_v4, -inf }
 0x218   :  { %739 = vmax.xlane.f32.xlu2 %v738_v5  ;;  %v530_v6 = vpop.f32.mrf.mxu0 }
 0x219   :  { %v744_v7 = vsel %vm37_vm1, %v530_v6, -inf  ;;  %v1997_v33 = vpop.f32.mrf.mxu2 }
 0x21a   :  { %745 = vmax.xlane.f32.xlu1 %v744_v7 }
 0x21e   :  { %v499_v8 = vpop.f32.mrf.mxu1 }
 0x21f   :  { %v741_v9 = vsel %vm37_vm1, %v499_v8, -inf }
 0x220   :  { %742 = vmax.xlane.f32.xlu0 %v741_v9 }
 0x221   :  { %v2001_v43 = vpop.f32.mrf.mxu2 }
 0x222   :  { %v747_v1 = vsel %vm37_vm1, %v2001_v43, -inf  ;;  %v2063_v28 = vpop.f32.mrf.mxu3 }
 0x226   :  { %v598_v10 = vpop.f32.mrf.mxu1  ;;  %v1953_v11 = vpop.f32.mrf.mxu0 }
 0x227   :  { %v756_v12 = vsel %vm37_vm1, %v598_v10, -inf  ;;  %v762_v14 = vsel %vm37_vm1, %v1953_v11, -inf }
 0x228   :  { %757 = vmax.xlane.f32.xlu2 %v756_v12 }
 0x229   :  { %v2015_v52 = vpop.f32.mrf.mxu2 }
 0x22a   :  { %v750_v59 = vsel %vm37_vm1, %v2015_v52, -inf }
 0x22e   :  { %v601_v13 = vpop.f32.mrf.mxu1  ;;  %v1959_v16 = vpop.f32.mrf.mxu0 }
 0x22f   :  { %v759_v15 = vsel %vm37_vm1, %v601_v13, -inf  ;;  %v765_v18 = vsel %vm37_vm1, %v1959_v16, -inf }
 0x230   :  { %763 = vmax.xlane.f32.xlu2 %v762_v14  ;;  %760 = vmax.xlane.f32.xlu1 %v759_v15 }
 0x231   :  { %v2025_v60 = vpop.f32.mrf.mxu2 }
 0x232   :  { %v753_v3 = vsel %vm37_vm1, %v2025_v60, -inf }
 0x236   :  { %v1961_v17 = vpop.f32.mrf.mxu1  ;;  %v1965_v19 = vpop.f32.mrf.mxu0 }
 0x237   :  { %v774_v51 = vsel %vm37_vm1, %v1961_v17, -inf  ;;  %v780_v57 = vsel %vm37_vm1, %v1965_v19, -inf }
 0x238   :  { %766 = vmax.xlane.f32.xlu1 %v765_v18 }
 0x239   :  { %v2037_v7 = vpop.f32.mrf.mxu2 }
 0x23e   :  { %v1967_v20 = vpop.f32.mrf.mxu1  ;;  %v1971_v22 = vpop.f32.mrf.mxu0 }
 0x23f   :  { %v777_v21 = vsel %vm37_vm1, %v1967_v20, -inf  ;;  %v783_v23 = vsel %vm37_vm1, %v1971_v22, -inf }
 0x240   :  { %778 = vmax.xlane.f32.xlu1 %v777_v21  ;;  %v227_v21 = vld [vmem:[%s2382_s4 + $0x88] sm:$0xff] }
 0x242   :  { %v2046_v15 = vpop.f32.mrf.mxu2 }
 0x248   :  { %784 = vmax.xlane.f32.xlu1 %v783_v23 }
 0x28b   :  { %v740_v31 = vpop.xlane.xlu2 %739 }
 0x28c   :  { %v786_v32 = vsub.f32 %v496_v4, %v740_v31 }
 0x28d   :  { %v746_v34 = vpop.xlane.xlu1 %745 }
 0x28e   :  { %v802_v35 = vmul.f32 1.442695, %v786_v32  ;;  %v788_v37 = vsub.f32 %v530_v6, %v746_v34 }
 0x290   :  { %1560 = vpow2.f32 %v802_v35  ;;  %v806_v38 = vmul.f32 1.442695, %v788_v37 }
 0x292   :  { %1562 = vpow2.f32 %v806_v38 }
 0x293   :  { %v743_v36 = vpop.xlane.xlu0 %742 }
 0x294   :  { %v787_v39 = vsub.f32 %v499_v8, %v743_v36 }
 0x296   :  { %v1999_v41 = vpop.eup %1560  ;;  %v804_v42 = vmul.f32 1.442695, %v787_v39 }
 0x297   :  { %v834_v45 = vsel %vm37_vm1, %v1999_v41, 0.0 }
 0x298   :  { %v2005_v46 = vpop.eup %1562  ;;  %1564 = vpow2.f32 %v804_v42  ;;  %835 = vadd.xlane.f32.xlu2 %v834_v45  ;;  %v2069_v42 = vpop.f32.mrf.mxu3 }
 0x299   :  { %v840_v40 = vsel %vm37_vm1, %v2005_v46, 0.0 }
 0x29a   :  { %841 = vadd.xlane.f32.xlu1 %v840_v40 }
 0x29b   :  { %v758_v47 = vpop.xlane.xlu2 %757 }
 0x29c   :  { %v792_v48 = vsub.f32 %v598_v10, %v758_v47 }
 0x29e   :  { %v2009_v49 = vpop.eup %1564  ;;  %v814_v50 = vmul.f32 1.442695, %v792_v48 }
 0x29f   :  { %v837_v44 = vsel %vm37_vm1, %v2009_v49, 0.0 }
 0x2a0   :  { %1566 = vpow2.f32 %v814_v50  ;;  %775 = vmax.xlane.f32.xlu2 %v774_v51  ;;  %838 = vadd.xlane.f32.xlu0 %v837_v44 }
 0x2a3   :  { %v761_v53 = vpop.xlane.xlu1 %760  ;;  %v764_v5 = vpop.xlane.xlu2 %763 }
 0x2a4   :  { %v793_v54 = vsub.f32 %v601_v13, %v761_v53  ;;  %v794_v10 = vsub.f32 %v1953_v11, %v764_v5  ;;  %v768_v13 = vsel %vm37_vm1, %v2037_v7, -inf  ;;  %v771_v11 = vsel %vm37_vm1, %v2046_v15, -inf }
 0x2a6   :  { %v2017_v55 = vpop.eup %1566  ;;  %v816_v56 = vmul.f32 1.442695, %v793_v54  ;;  %v818_v14 = vmul.f32 1.442695, %v794_v10 }
 0x2a7   :  { %v852_v58 = vsel %vm37_vm1, %v2017_v55, 0.0 }
 0x2a8   :  { %781 = vmax.xlane.f32.xlu2 %v780_v57  ;;  %853 = vadd.xlane.f32.xlu1 %v852_v58  ;;  %1568 = vpow2.f32 %v816_v56 }
 0x2a9   :  { %751 = vmax.xlane.f32.xlu0 %v750_v59 }
 0x2ab   :  { %v767_v61 = vpop.xlane.xlu1 %766 }
 0x2ac   :  { %v795_v62 = vsub.f32 %v1959_v16, %v767_v61 }
 0x2ae   :  { %v820_v63 = vmul.f32 1.442695, %v795_v62  ;;  %v2028_v0 = vpop.eup %1568 }
 0x2af   :  { %v855_v2 = vsel %vm37_vm1, %v2028_v0, 0.0 }
 0x2b0   :  { %1570 = vpow2.f32 %v820_v63  ;;  %748 = vmax.xlane.f32.xlu2 %v747_v1  ;;  %856 = vadd.xlane.f32.xlu1 %v855_v2 }
 0x2b1   :  { %754 = vmax.xlane.f32.xlu0 %v753_v3 }
 0x2b3   :  { %v779_v4 = vpop.xlane.xlu1 %778 }
 0x2b4   :  { %v799_v6 = vsub.f32 %v1967_v20, %v779_v4 }
 0x2b6   :  { %v2039_v8 = vpop.eup %1570  ;;  %v828_v9 = vmul.f32 1.442695, %v799_v6 }
 0x2b7   :  { %v861_v12 = vsel %vm37_vm1, %v2039_v8, 0.0 }
 0x2b8   :  { %1572 = vpow2.f32 %v828_v9  ;;  %862 = vadd.xlane.f32.xlu1 %v861_v12 }
 0x2b9   :  { %769 = vmax.xlane.f32.xlu0 %v768_v13  ;;  %1574 = vpow2.f32 %v818_v14 }
 0x2bb   :  { %v2061_v25 = vpop.xlane.xlu1 %784 }
 0x2be   :  { %v2048_v16 = vpop.eup %1572 }
 0x2bf   :  { %v873_v18 = vsel %vm37_vm1, %v2048_v16, 0.0  ;;  %v2054_v20 = vpop.eup %1574 }
 0x2c0   :  { %874 = vadd.xlane.f32.xlu1 %v873_v18  ;;  %v858_v23 = vsel %vm37_vm1, %v2054_v20, 0.0 }
 0x2c1   :  { %772 = vmax.xlane.f32.xlu0 %v771_v11 }
 0x2c8   :  { %317 = vperm.xlu2 %1558, %v227_v21  }
 0x2c9   :  { %859 = vadd.xlane.f32.xlu0 %v858_v23  ;;  %v2089_v23 = vpop.f32.mrf.mxu3 }
 0x30b   :  { %v836_v26 = vpop.xlane.xlu2 %835 }
 0x30c   :  { %1576 = vrcp.f32 %v836_v26  ;;  %v891_v45 = vand.u32 2147483647, %v836_v26  ;;  %v893_v40 = vand.u32 2147483648, %v836_v26  ;;  %vm887_vm8 = vweird.f32 %v836_v26 }
 0x30d   :  { %v842_v30 = vpop.xlane.xlu1 %841 }
 0x30e   :  { %1578 = vrcp.f32 %v842_v30  ;;  %v921_v51 = vand.u32 2147483648, %v842_v30  ;;  %v919_v54 = vand.u32 2147483647, %v842_v30  ;;  %vm892_vm11 = vcmp.eq.f32.partialorder %v891_v45, 8.507059e+37 }
 0x30f   :  { %v894_v57 = vor.u32 1.1754944e-38, %v893_v40  ;;  %vm915_vm12 = vweird.f32 %v842_v30 }
 0x310   :  { %v922_v2 = vor.u32 1.1754944e-38, %v921_v51  ;;  %vm920_vm14 = vcmp.eq.f32.partialorder %v919_v54, 8.507059e+37  ;;  %v459_v54 = vpop.f32.mrf.mxu3 }
 0x312   :  { %v1577_v31 = vpop.eup %1576 }
 0x313   :  { %v883_v32 = vmul.f32 %v1577_v31, %v836_v26  ;;  %v776_v34 = vpop.xlane.xlu2 %775  ;;  %v2065_v35 = vpop.xlane.xlu0 %838  ;;  %vm888_vm7 = vweird.f32 %v1577_v31 }
 0x314   :  { %v1579_v37 = vpop.eup %1578  ;;  %v798_v38 = vsub.f32 %v1961_v17, %v776_v34  ;;  %1580 = vrcp.f32 %v2065_v35  ;;  %v208_v17 = vld [vmem:[%s2381_s3 + $0x90] sm:$0xff]  ;;  %vm889_vm10 = vmor %vm887_vm8, %vm888_vm7  ;;  %v907_v9 = vand.u32 2147483648, %v2065_v35  ;;  %v905_v18 = vand.u32 2147483647, %v2065_v35 }
 0x315   :  { %v884_v36 = vsub.f32 1.0, %v883_v32  ;;  %v911_v39 = vmul.f32 %v1579_v37, %v842_v30  ;;  %vm916_vm9 = vweird.f32 %v1579_v37  ;;  %1485 = vmatmul.msk.f32.gmra.mxu3 %vm330_vm2, %v208_v17  ;;  %vm901_vm0 = vweird.f32 %v2065_v35 }
 0x316   :  { %v826_v47 = vmul.f32 1.442695, %v798_v38  ;;  %vm917_vm13 = vmor %vm915_vm12, %vm916_vm9  ;;  %vm906_vm5 = vcmp.eq.f32.partialorder %v905_v18, 8.507059e+37 }
 0x317   :  { %v885_v48 = vmul.f32 %v1577_v31, %v884_v36  ;;  %v912_v50 = vsub.f32 1.0, %v911_v39 }
 0x318   :  { %1582 = vpow2.f32 %v826_v47 }
 0x319   :  { %v886_v44 = vadd.f32 %v1577_v31, %v885_v48  ;;  %v913_v53 = vmul.f32 %v1579_v37, %v912_v50 }
 0x31a   :  { %v1581_v56 = vpop.eup %1580 }
 0x31b   :  { %v890_v58 = vsel %vm889_vm10, %v1577_v31, %v886_v44  ;;  %v914_v59 = vadd.f32 %v1579_v37, %v913_v53  ;;  %v897_v61 = vmul.f32 %v1581_v56, %v2065_v35  ;;  %v782_v62 = vpop.xlane.xlu2 %781  ;;  %v2076_v63 = vpop.xlane.xlu1 %853  ;;  %vm902_vm15 = vweird.f32 %v1581_v56 }
 0x31c   :  { %v895_v1 = vsel %vm892_vm11, %v894_v57, %v890_v58  ;;  %v800_v3 = vsub.f32 %v1965_v19, %v782_v62  ;;  %1584 = vrcp.f32 %v2076_v63  ;;  %v752_v4 = vpop.xlane.xlu0 %751  ;;  %v908_v31 = vor.u32 1.1754944e-38, %v907_v9  ;;  %vm903_vm4 = vmor %vm901_vm0, %vm902_vm15 }
 0x31d   :  { %v918_v5 = vsel %vm917_vm13, %v1579_v37, %v914_v59  ;;  %v898_v6 = vsub.f32 1.0, %v897_v61  ;;  %v1106_v14 = vmul.f32 %v1999_v41, %v895_v1  ;;  %v790_v21 = vsub.f32 %v2015_v52, %v752_v4 }
 0x31e   :  { %v2082_v10 = vpop.eup %1582  ;;  %v923_v12 = vsel %vm920_vm14, %v922_v2, %v918_v5  ;;  %v830_v13 = vmul.f32 1.442695, %v800_v3  ;;  %v975_v35 = vand.u32 2147483647, %v2076_v63  ;;  %v977_v47 = vand.u32 2147483648, %v2076_v63 }
 0x31f   :  { %v899_v11 = vmul.f32 %v1581_v56, %v898_v6  ;;  %v870_v19 = vsel %vm37_vm1, %v2082_v10, 0.0  ;;  %1513 = vmatmul.msk.f32.vlgmr.msra.gmra.mxu2 %vm37_vm1, %v1106_v14  ;;  %v1108_v26 = vmul.f32 %v2005_v46, %v923_v12  ;;  %v810_v32 = vmul.f32 1.442695, %v790_v21 }
 0x320   :  { %1586 = vpow2.f32 %v830_v13  ;;  %871 = vadd.xlane.f32.xlu2 %v870_v19  ;;  %vm971_vm7 = vweird.f32 %v2076_v63  ;;  %vm976_vm9 = vcmp.eq.f32.partialorder %v975_v35, 8.507059e+37  ;;  %v801_v4 = vsub.f32 %v1971_v22, %v2061_v25  ;;  %v229_v35 = vld [vmem:[%s2382_s4 + $0x98] sm:$0xff] }
 0x321   :  { %v900_v41 = vadd.f32 %v1581_v56, %v899_v11  ;;  %1517 = vmatmul.msk.f32.vlgmr.msra.gmra.mxu1 %vm37_vm1, %v1108_v26 }
 0x322   :  { %v1585_v30 = vpop.eup %1584  ;;  %v832_v25 = vmul.f32 1.442695, %v801_v4 }
 0x323   :  { %v967_v52 = vmul.f32 %v1585_v30, %v2076_v63  ;;  %v749_v34 = vpop.xlane.xlu2 %748  ;;  %v904_v37 = vsel %vm903_vm4, %v1581_v56, %v900_v41  ;;  %v857_v36 = vpop.xlane.xlu1 %856  ;;  %vm972_vm6 = vweird.f32 %v1585_v30 }
 0x324   :  { %v789_v38 = vsub.f32 %v2001_v43, %v749_v34  ;;  %v755_v39 = vpop.xlane.xlu0 %754  ;;  %v909_v45 = vsel %vm906_vm5, %v908_v31, %v904_v37  ;;  %1588 = vrcp.f32 %v857_v36  ;;  %vm973_vm8 = vmor %vm971_vm7, %vm972_vm6  ;;  %v991_v14 = vand.u32 2147483648, %v857_v36 }
 0x325   :  { %v968_v46 = vsub.f32 1.0, %v967_v52  ;;  %v791_v50 = vsub.f32 %v2025_v60, %v755_v39  ;;  %v1107_v51 = vmul.f32 %v2009_v49, %v909_v45  ;;  %1590 = vpow2.f32 %v810_v32  ;;  %v209_v60 = vld [vmem:[%s2381_s3 + $0x98] sm:$0xff]  ;;  %v224_v39 = vld [vmem:[%s2382_s4 + $0x70] sm:$0xff] }
 0x326   :  { %v2098_v40 = vpop.eup %1586  ;;  %v808_v48 = vmul.f32 1.442695, %v789_v38  ;;  %v978_v49 = vor.u32 1.1754944e-38, %v977_v47  ;;  %1486 = vmatmul.msk.f32.gmra.mxu3 %vm330_vm2, %v209_v60  ;;  %v989_v22 = vand.u32 2147483647, %v857_v36  ;;  %vm985_vm10 = vweird.f32 %v857_v36  ;;  %v225_v45 = vld [vmem:[%s2382_s4 + $0x78] sm:$0xff] }
 0x327   :  { %v969_v44 = vmul.f32 %v1585_v30, %v968_v46  ;;  %v876_v43 = vsel %vm37_vm1, %v2098_v40, 0.0  ;;  %1514 = vmatmul.msk.f32.gmra.mxu2 %vm37_vm1, %v1107_v51  ;;  %v812_v17 = vmul.f32 1.442695, %v791_v50  ;;  %v992_v11 = vor.u32 1.1754944e-38, %v991_v14  ;;  %v228_v46 = vld [vmem:[%s2382_s4 + $0x90] sm:$0xff] }
 0x328   :  { %1592 = vpow2.f32 %v808_v48  ;;  %877 = vadd.xlane.f32.xlu2 %v876_v43  ;;  %vm990_vm12 = vcmp.eq.f32.partialorder %v989_v22, 8.507059e+37 }
 0x329   :  { %v970_v53 = vadd.f32 %v1585_v30, %v969_v44  ;;  %1594 = vpow2.f32 %v812_v17 }
 0x32a   :  { %v1589_v56 = vpop.eup %1588 }
 0x32b   :  { %v974_v57 = vsel %vm973_vm8, %v1585_v30, %v970_v53  ;;  %v318_v58 = vpop.permute.xlu2 %317  ;;  %v981_v61 = vmul.f32 %v1589_v56, %v857_v36  ;;  %v2111_v2 = vpop.eup %1590  ;;  %vm986_vm2 = vweird.f32 %v1589_v56  ;;  %v226_v36 = vld [vmem:[%s2382_s4 + $0x80] sm:$0xff] }
 0x32c   :  { %v979_v59 = vsel %vm976_vm9, %v978_v49, %v974_v57  ;;  %v460_v62 = vadd.f32 %v459_v54, %v318_v58  ;;  %v770_v1 = vpop.xlane.xlu0 %769  ;;  %vm987_vm11 = vmor %vm985_vm10, %vm986_vm2  ;;  %v2159_v47 = vpop.xlane.xlu1 %862 }
 0x32d   :  { %v796_v63 = vsub.f32 %v2037_v7, %v770_v1  ;;  %v982_v5 = vsub.f32 1.0, %v981_v61  ;;  %v1112_v6 = vmul.f32 %v2017_v55, %v979_v59  ;;  %v846_v7 = vsel %vm37_vm1, %v2111_v2, 0.0 }
 0x32e   :  { %v2114_v3 = vpop.eup %1592  ;;  %1535 = vmatpush.xpose.msk.msra.mxu2 %vm37_vm1, %v460_v62 }
 0x32f   :  { %v822_v9 = vmul.f32 1.442695, %v796_v63  ;;  %v843_v12 = vsel %vm37_vm1, %v2114_v3, 0.0  ;;  %v983_v13 = vmul.f32 %v1589_v56, %v982_v5  ;;  %1525 = vmatmul.msk.f32.vlgmr.msrb.gmra.mxu2 %vm37_vm1, %v1112_v6  ;;  %v2125_v55 = vpop.eup %1594 }
 0x330   :  { %844 = vadd.xlane.f32.xlu1 %v843_v12  ;;  %847 = vadd.xlane.f32.xlu2 %v846_v7  ;;  %v849_v32 = vsel %vm37_vm1, %v2125_v55, 0.0 }
 0x331   :  { %1596 = vpow2.f32 %v822_v9  ;;  %v984_v18 = vadd.f32 %v1589_v56, %v983_v13 }
 0x332   :  { %1598 = vpow2.f32 %v832_v25 }
 0x333   :  { %v988_v19 = vsel %vm987_vm11, %v1589_v56, %v984_v18 }
 0x334   :  { %v773_v21 = vpop.xlane.xlu0 %772  ;;  %v993_v41 = vsel %vm990_vm12, %v992_v11, %v988_v19  ;;  %v2161_v48 = vpop.xlane.xlu1 %874 }
 0x335   :  { %v797_v26 = vsub.f32 %v2046_v15, %v773_v21  ;;  %v1113_v52 = vmul.f32 %v2028_v0, %v993_v41  ;;  %v1075_v6 = vand.u32 2147483648, %v2161_v48  ;;  %vm1069_vm4 = vweird.f32 %v2161_v48 }
 0x337   :  { %v2128_v30 = vpop.eup %1596  ;;  %v824_v31 = vmul.f32 1.442695, %v797_v26  ;;  %1526 = vmatmul.msk.f32.gmra.mxu2 %vm37_vm1, %v1113_v52 }
 0x338   :  { %850 = vadd.xlane.f32.xlu1 %v849_v32  ;;  %v864_v34 = vsel %vm37_vm1, %v2128_v30, 0.0  ;;  %v2136_v15 = vpop.eup %1598 }
 0x339   :  { %1600 = vpow2.f32 %v824_v31  ;;  %865 = vadd.xlane.f32.xlu0 %v864_v34  ;;  %v879_v38 = vsel %vm37_vm1, %v2136_v15, 0.0  ;;  %v1073_v31 = vand.u32 2147483647, %v2161_v48 }
 0x33b   :  { %vm1074_vm2 = vcmp.eq.f32.partialorder %v1073_v31, 8.507059e+37 }
 0x33c   :  { %v2170_v60 = vpop.xlane.xlu0 %859 }
 0x33d   :  { %vm999_vm12 = vweird.f32 %v2170_v60 }
 0x33f   :  { %v2138_v37 = vpop.eup %1600 }
 0x340   :  { %880 = vadd.xlane.f32.xlu1 %v879_v38  ;;  %v867_v0 = vsel %vm37_vm1, %v2138_v37, 0.0 }
 0x341   :  { %868 = vadd.xlane.f32.xlu0 %v867_v0  ;;  %v1076_v0 = vor.u32 1.1754944e-38, %v1075_v6 }
 0x348   :  { %312 = vperm.xlu2 %1558, %v226_v36  }
 0x350   :  { %302 = vperm.xlu2 %1558, %v224_v39  }
 0x355   :  { %307 = vperm.xlu0 %1559, %v225_v45  }
 0x358   :  { %322 = vperm.xlu2 %1558, %v228_v46  }
 0x359   :  { %327 = vperm.xlu1 %1557, %v229_v35  }
 0x393   :  { %v872_v50 = vpop.xlane.xlu2 %871 }
 0x394   :  { %1602 = vrcp.f32 %v872_v50  ;;  %v1061_v63 = vand.u32 2147483648, %v872_v50  ;;  %vm1055_vm14 = vweird.f32 %v872_v50  ;;  %v1059_v5 = vand.u32 2147483647, %v872_v50 }
 0x395   :  { %1604 = vrcp.f32 %v2161_v48 }
 0x396   :  { %1606 = vrcp.f32 %v2159_v47  ;;  %v1062_v25 = vor.u32 1.1754944e-38, %v1061_v63  ;;  %vm1060_vm5 = vcmp.eq.f32.partialorder %v1059_v5, 8.507059e+37  ;;  %v1003_v5 = vand.u32 2147483647, %v2170_v60 }
 0x397   :  { %1608 = vrcp.f32 %v2170_v60 }
 0x39a   :  { %v1603_v51 = vpop.eup %1602 }
 0x39b   :  { %v2164_v44 = vpop.eup %1604  ;;  %v1051_v43 = vmul.f32 %v1603_v51, %v872_v50  ;;  %v2166_v53 = vpop.xlane.xlu2 %877  ;;  %vm1056_vm13 = vweird.f32 %v1603_v51 }
 0x39c   :  { %v1065_v54 = vmul.f32 %v2164_v44, %v2161_v48  ;;  %v2179_v59 = vpop.eup %1606  ;;  %vm2190_vm15 = vmor %vm1055_vm14, %vm1056_vm13  ;;  %vm1070_vm0 = vweird.f32 %v2164_v44 }
 0x39d   :  { %v1052_v49 = vsub.f32 1.0, %v1051_v43  ;;  %v2183_v1 = vpop.eup %1608  ;;  %v2187_v4 = vmul.f32 %v2179_v59, %v2159_v47  ;;  %vm2216_vm6 = vmor %vm1069_vm4, %vm1070_vm0 }
 0x39e   :  { %v1066_v17 = vsub.f32 1.0, %v1065_v54  ;;  %v995_v13 = vmul.f32 %v2183_v1, %v2170_v60 }
 0x39f   :  { %v1053_v56 = vmul.f32 %v1603_v51, %v1052_v49  ;;  %v1010_v21 = vsub.f32 1.0, %v2187_v4 }
 0x3a0   :  { %v1067_v61 = vmul.f32 %v2164_v44, %v1066_v17  ;;  %v996_v36 = vsub.f32 1.0, %v995_v13 }
 0x3a1   :  { %v1054_v62 = vadd.f32 %v1603_v51, %v1053_v56 }
 0x3a2   :  { %v1068_v7 = vadd.f32 %v2164_v44, %v1067_v61  ;;  %v997_v43 = vmul.f32 %v2183_v1, %v996_v36 }
 0x3a3   :  { %v2174_v57 = vpop.xlane.xlu1 %844  ;;  %v2177_v58 = vpop.xlane.xlu2 %847  ;;  %v1058_v14 = vsel %vm2190_vm15, %v1603_v51, %v1054_v62  ;;  %vm1000_vm15 = vweird.f32 %v2183_v1 }
 0x3a4   :  { %1610 = vrcp.f32 %v2174_v57  ;;  %v1063_v52 = vsel %vm1060_vm5, %v1062_v25, %v1058_v14  ;;  %v1072_v45 = vsel %vm2216_vm6, %v2164_v44, %v1068_v7  ;;  %v947_v35 = vand.u32 2147483647, %v2177_v58  ;;  %vm2268_vm5 = vmor %vm999_vm12, %vm1000_vm15 }
 0x3a5   :  { %1612 = vrcp.f32 %v2177_v58  ;;  %v1118_v50 = vmul.f32 %v2082_v10, %v1063_v52  ;;  %vm929_vm9 = vweird.f32 %v2174_v57  ;;  %v935_v51 = vand.u32 2147483648, %v2174_v57 }
 0x3a6   :  { %vm943_vm10 = vweird.f32 %v2177_v58  ;;  %v933_v10 = vand.u32 2147483647, %v2174_v57  ;;  %v1077_v61 = vsel %vm1074_vm2, %v1076_v0, %v1072_v45  ;;  %vm948_vm14 = vcmp.eq.f32.partialorder %v947_v35, 8.507059e+37 }
 0x3a7   :  { %v936_v6 = vor.u32 1.1754944e-38, %v935_v51  ;;  %v998_v7 = vadd.f32 %v2183_v1, %v997_v43 }
 0x3a8   :  { %vm934_vm0 = vcmp.eq.f32.partialorder %v933_v10, 8.507059e+37 }
 0x3a9   :  { %v1002_v4 = vsel %vm2268_vm5, %v2183_v1, %v998_v7 }
 0x3aa   :  { %v2194_v12 = vpop.eup %1610 }
 0x3ab   :  { %v1613_v22 = vpop.eup %1612  ;;  %v925_v18 = vmul.f32 %v2194_v12, %v2174_v57  ;;  %v2205_v11 = vpop.xlane.xlu1 %850  ;;  %vm930_vm7 = vweird.f32 %v2194_v12  ;;  %v1005_v57 = vand.u32 2147483648, %v2170_v60 }
 0x3ac   :  { %v939_v19 = vmul.f32 %v1613_v22, %v2177_v58  ;;  %v313_v26 = vpop.permute.xlu2 %312  ;;  %v2209_v41 = vpop.xlane.xlu0 %865  ;;  %1614 = vrcp.f32 %v2205_v11  ;;  %vm944_vm8 = vweird.f32 %v1613_v22  ;;  %vm2236_vm11 = vmor %vm929_vm9, %vm930_vm7  ;;  %v963_v25 = vand.u32 2147483648, %v2205_v11 }
 0x3ad   :  { %v926_v32 = vsub.f32 1.0, %v925_v18  ;;  %v457_v34 = vadd.f32 %v2089_v23, %v313_v26  ;;  %v949_v23 = vand.u32 2147483648, %v2177_v58  ;;  %1616 = vrcp.f32 %v2209_v41  ;;  %vm945_vm13 = vmor %vm943_vm10, %vm944_vm8 }
 0x3ae   :  { %v940_v39 = vsub.f32 1.0, %v939_v19  ;;  %1618 = vrcp.f32 %v2166_v53  ;;  %v1119_v19 = vmul.f32 %v2048_v16, %v1077_v61  ;;  %vm957_vm6 = vweird.f32 %v2205_v11 }
 0x3af   :  { %v927_v46 = vmul.f32 %v2194_v12, %v926_v32  ;;  %1536 = vmatpush.xpose.msk.msra.mxu2 %vm37_vm1, %v457_v34  ;;  %v950_v56 = vor.u32 1.1754944e-38, %v949_v23  ;;  %v1011_v32 = vmul.f32 %v2179_v59, %v1010_v21  ;;  %vm1004_vm7 = vcmp.eq.f32.partialorder %v1003_v5, 8.507059e+37 }
 0x3b0   :  { %v941_v48 = vmul.f32 %v1613_v22, %v940_v39  ;;  %v1006_v21 = vor.u32 1.1754944e-38, %v1005_v57  ;;  %vm1014_vm9 = vweird.f32 %v2179_v59  ;;  %v964_v0 = vor.u32 1.1754944e-38, %v963_v25 }
 0x3b1   :  { %v928_v44 = vadd.f32 %v2194_v12, %v927_v46  ;;  %v1012_v39 = vadd.f32 %v2179_v59, %v1011_v32  ;;  %v1019_v46 = vand.u32 2147483648, %v2159_v47  ;;  %vm1013_vm10 = vweird.f32 %v2159_v47 }
 0x3b2   :  { %v942_v54 = vadd.f32 %v1613_v22, %v941_v48  ;;  %1537 = vmatmul.msk.f32.vlgmr.msra.gmra.mxu2 %vm37_vm1, %v1118_v50  ;;  %v1615_v17 = vpop.eup %1614  ;;  %v1007_v36 = vsel %vm1004_vm7, %v1006_v21, %v1002_v4  ;;  %v1017_v48 = vand.u32 2147483647, %v2159_v47 }
 0x3b3   :  { %v953_v58 = vmul.f32 %v1615_v17, %v2205_v11  ;;  %v932_v63 = vsel %vm2236_vm11, %v2194_v12, %v928_v44  ;;  %v2252_v14 = vpop.eup %1616  ;;  %vm958_vm4 = vweird.f32 %v1615_v17  ;;  %v1114_v51 = vmul.f32 %v2054_v20, %v1007_v36  ;;  %vm1015_vm11 = vmor %vm1013_vm10, %vm1014_vm9 }
 0x3b4   :  { %v946_v62 = vsel %vm945_vm13, %v1613_v22, %v942_v54  ;;  %v2250_v13 = vpop.xlane.xlu0 %868  ;;  %v937_v18 = vsel %vm934_vm0, %v936_v6, %v932_v63  ;;  %v2261_v52 = vpop.eup %1618  ;;  %v1023_v16 = vmul.f32 %v2252_v14, %v2209_v41  ;;  %vm959_vm8 = vmor %vm957_vm6, %vm958_vm4  ;;  %v1016_v49 = vsel %vm1015_vm11, %v2179_v59, %v1012_v39 }
 0x3b5   :  { %v951_v9 = vsel %vm948_vm14, %v950_v56, %v946_v62  ;;  %v954_v22 = vsub.f32 1.0, %v953_v58  ;;  %1620 = vrcp.f32 %v2250_v13  ;;  %v1109_v31 = vmul.f32 %v2114_v3, %v937_v18  ;;  %v462_v54 = vpop.f32.mrf.mxu3  ;;  %v303_v47 = vpop.permute.xlu2 %302 }
 0x3b6   :  { %v1110_v12 = vmul.f32 %v2111_v2, %v951_v9  ;;  %v2274_v2 = vpop.xlane.xlu1 %880  ;;  %v961_v3 = vand.u32 2147483647, %v2205_v11  ;;  %v1079_v38 = vmul.f32 %v2261_v52, %v2166_v53  ;;  %v1024_v11 = vsub.f32 1.0, %v1023_v16 }
 0x3b7   :  { %v955_v26 = vmul.f32 %v1615_v17, %v954_v22  ;;  %1518 = vmatmul.msk.f32.gmra.mxu1 %vm37_vm1, %v1109_v31  ;;  %1622 = vrcp.f32 %v2274_v2  ;;  %vm1018_vm12 = vcmp.eq.f32.partialorder %v1017_v48, 8.507059e+37  ;;  %vm1028_vm13 = vweird.f32 %v2252_v14 }
 0x3b8   :  { %1521 = vmatmul.msk.f32.vlgmr.msrb.gmra.mxu0 %vm37_vm1, %v1110_v12  ;;  %vm962_vm2 = vcmp.eq.f32.partialorder %v961_v3, 8.507059e+37  ;;  %v1080_v50 = vsub.f32 1.0, %v1079_v38  ;;  %v1025_v44 = vmul.f32 %v2252_v14, %v1024_v11  ;;  %v1033_v59 = vand.u32 2147483648, %v2209_v41 }
 0x3b9   :  { %v956_v60 = vadd.f32 %v1615_v17, %v955_v26  ;;  %vm1027_vm14 = vweird.f32 %v2209_v41  ;;  %v1031_v58 = vand.u32 2147483647, %v2209_v41  ;;  %vm1084_vm15 = vweird.f32 %v2261_v52 }
 0x3ba   :  { %1538 = vmatmul.msk.f32.gmra.mxu2 %vm37_vm1, %v1119_v19  ;;  %v1081_v20 = vmul.f32 %v2261_v52, %v1080_v50  ;;  %v1026_v56 = vadd.f32 %v2252_v14, %v1025_v44  ;;  %vm2316_vm0 = vmor %vm1027_vm14, %vm1028_vm13  ;;  %v1089_v18 = vand.u32 2147483648, %v2166_v53  ;;  %v1034_v12 = vor.u32 1.1754944e-38, %v1033_v59  ;;  %v1191_v44 = vpop.f32.mrf.mxu1 }
 0x3bb   :  { %v960_v1 = vsel %vm959_vm8, %v1615_v17, %v956_v60  ;;  %v2290_v45 = vpop.eup %1620  ;;  %vm1083_vm4 = vweird.f32 %v2166_v53  ;;  %vm1032_vm5 = vcmp.eq.f32.partialorder %v1031_v58, 8.507059e+37  ;;  %v451_v26 = vadd.f32 %v2063_v28, %v303_v47 }
 0x3bc   :  { %v965_v35 = vsel %vm962_vm2, %v964_v0, %v960_v1  ;;  %v1037_v43 = vmul.f32 %v2290_v45, %v2250_v13  ;;  %v1082_v9 = vadd.f32 %v2261_v52, %v1081_v20  ;;  %v1030_v7 = vsel %vm2316_vm0, %v2252_v14, %v1026_v56  ;;  %vm2334_vm6 = vmor %vm1083_vm4, %vm1084_vm15 }
 0x3bd   :  { %v1111_v23 = vmul.f32 %v2125_v55, %v965_v35  ;;  %v2304_v10 = vpop.eup %1622  ;;  %v1020_v55 = vor.u32 1.1754944e-38, %v1019_v46  ;;  %v465_v25 = vpop.f32.mrf.mxu3  ;;  %v1035_v19 = vsel %vm1032_vm5, %v1034_v12, %v1030_v7  ;;  %vm1042_vm7 = vweird.f32 %v2290_v45 }
 0x3be   :  { %v1093_v61 = vmul.f32 %v2304_v10, %v2274_v2  ;;  %v1038_v62 = vsub.f32 1.0, %v1037_v43  ;;  %v1086_v32 = vsel %vm2334_vm6, %v2261_v52, %v1082_v9  ;;  %v323_v16 = vpop.permute.xlu2 %322  ;;  %v1090_v3 = vor.u32 1.1754944e-38, %v1089_v18 }
 0x3bf   :  { %1529 = vmatmul.msk.f32.vlgmr.msrb.gmra.mxu1 %vm37_vm1, %v1114_v51  ;;  %v1021_v17 = vsel %vm1018_vm12, %v1020_v55, %v1016_v49  ;;  %v1047_v4 = vand.u32 2147483648, %v2250_v13  ;;  %vm1041_vm9 = vweird.f32 %v2250_v13  ;;  %v1116_v28 = vmul.f32 %v2128_v30, %v1035_v19 }
 0x3c0   :  { %1522 = vmatmul.msk.f32.gmra.mxu0 %vm37_vm1, %v1111_v23  ;;  %v1115_v6 = vmul.f32 %v2039_v8, %v1021_v17  ;;  %v1094_v22 = vsub.f32 1.0, %v1093_v61  ;;  %v1039_v41 = vmul.f32 %v2290_v45, %v1038_v62  ;;  %v1087_v8 = vand.u32 2147483647, %v2166_v53  ;;  %vm1043_vm2 = vmor %vm1041_vm9, %vm1042_vm7 }
 0x3c1   :  { %v1045_v52 = vand.u32 2147483647, %v2250_v13  ;;  %v463_v21 = vadd.f32 %v462_v54, %v323_v16  ;;  %vm1098_vm10 = vweird.f32 %v2304_v10  ;;  %v1103_v1 = vand.u32 2147483648, %v2274_v2 }
 0x3c2   :  { %v1095_v34 = vmul.f32 %v2304_v10, %v1094_v22  ;;  %v1040_v53 = vadd.f32 %v2290_v45, %v1039_v41  ;;  %vm1088_vm8 = vcmp.eq.f32.partialorder %v1087_v8, 8.507059e+37  ;;  %v1048_v36 = vor.u32 1.1754944e-38, %v1047_v4 }
 0x3c3   :  { %v1091_v60 = vsel %vm1088_vm8, %v1090_v3, %v1086_v32  ;;  %vm1097_vm11 = vweird.f32 %v2274_v2  ;;  %vm1046_vm12 = vcmp.eq.f32.partialorder %v1045_v52, 8.507059e+37  ;;  %v1101_v13 = vand.u32 2147483647, %v2274_v2  ;;  %v1624_v2 = vld [vmem:[%s2384_s6] sm:$0x7]  ;;  %s1656_s6 = smov 16  }
 0x3c4   :  { %v1044_v38 = vsel %vm1043_vm2, %v2290_v45, %v1040_v53  ;;  %v1096_v0 = vadd.f32 %v2304_v10, %v1095_v34  ;;  %v1120_v30 = vmul.f32 %v2098_v40, %v1091_v60  ;;  %vm1099_vm13 = vmor %vm1097_vm11, %vm1098_vm10  ;;  %v1104_v45 = vor.u32 1.1754944e-38, %v1103_v1  ;;  %v1154_v40 = vpop.f32.mrf.mxu2 }
 0x3c5   :  { %v1049_v11 = vsel %vm1046_vm12, %v1048_v36, %v1044_v38  ;;  %vm1102_vm14 = vcmp.eq.f32.partialorder %v1101_v13, 8.507059e+37  ;;  %v1122_v48 = vperm.slane %v1624_v2, 2 }
 0x3c6   :  { %v1100_v39 = vsel %vm1099_vm13, %v2304_v10, %v1096_v0  ;;  %v1117_v46 = vmul.f32 %v2138_v37, %v1049_v11 }
 0x3c7   :  { %v308_v63 = vpop.permute.xlu0 %307  ;;  %1530 = vmatmul.msk.f32.gmra.mxu1 %vm37_vm1, %v1115_v6  ;;  %v1105_v35 = vsel %vm1102_vm14, %v1104_v45, %v1100_v39  ;;  %v1123_v51 = vadd.f32 %v1122_v48, %v1975_v24  ;;  %v1276_v22 = vadd.f32 %v1122_v48, %v1997_v33 }
 0x3c8   :  { %v454_v57 = vadd.f32 %v2069_v42, %v308_v63  ;;  %v1121_v23 = vmul.f32 %v2136_v15, %v1105_v35  ;;  %v1124_v15 = vadd.f32 %v1122_v48, %v1984_v27  ;;  %v1275_v63 = vadd.f32 %v1122_v48, %v1991_v29 }
 0x3c9   :  { %v1160_v43 = vadd.f32 %v1154_v40, %v1123_v51 }
 0x3ca   :  { %1531 = vmatpush.xpose.msk.msra.mxu0 %vm37_vm1, %v454_v57 }
 0x3cb   :  { %v328_v42 = vpop.permute.xlu1 %327  ;;  %v1197_v37 = vadd.f32 %v1191_v44, %v1160_v43 }
 0x3cc   :  { %v466_v31 = vadd.f32 %v465_v25, %v328_v42  ;;  %v1157_v50 = vpop.f32.mrf.mxu2 }
 0x3cd   :  { %v1161_v20 = vadd.f32 %v1157_v50, %v1124_v15 }
 0x3ce   :  { %1532 = vmatpush.xpose.msk.msra.mxu0 %vm37_vm1, %v451_v26  ;;  %1539 = vmatpush.xpose.msk.msra.mxu1 %vm37_vm1, %v466_v31 }
 0x3d1   :  { %1533 = vmatmul.msk.f32.vlgmr.msra.gmra.mxu0 %vm37_vm1, %v1116_v28 }
 0x3d2   :  { %1540 = vmatpush.xpose.msk.msra.mxu1 %vm37_vm1, %v463_v21 }
 0x3d4   :  { %v1265_v54 = vpop.f32.mrf.mxu2 }
 0x3d5   :  { %1541 = vmatmul.msk.f32.vlgmr.msra.gmra.mxu1 %vm37_vm1, %v1120_v30 }
 0x3d9   :  { %1534 = vmatmul.msk.f32.gmra.mxu0 %vm37_vm1, %v1117_v46 }
 0x3dc   :  { %v1268_v62 = vpop.f32.mrf.mxu2 }
 0x3dd   :  { %1542 = vmatmul.msk.f32.gmra.mxu1 %vm37_vm1, %v1121_v23  ;;  %vm1433_vm1 = vcmask 261248  }
 0x434   :  { %v1194_v10 = vpop.f32.mrf.mxu1 }
 0x435   :  { %v1228_v49 = vpop.f32.mrf.mxu0  ;;  %v1198_v17 = vadd.f32 %v1194_v10, %v1161_v20  ;;  %v1380_v57 = vpop.f32.mrf.mxu2 }
 0x436   :  { %v1234_v55 = vadd.f32 %v1228_v49, %v1197_v37 }
 0x438   :  { %v1271_v47 = vadd.f32 %v1265_v54, %v1234_v55 }
 0x43a   :  { %1273 = vst.msk [vmem:[#allocation2] sm:$0xff] %vm86_vm3, %v1271_v47 }
 0x43c   :  { %v1306_v59 = vpop.f32.mrf.mxu1 }
 0x43d   :  { %v1231_v56 = vpop.f32.mrf.mxu0  ;;  %v1312_v5 = vadd.f32 %v1306_v59, %v1275_v63  ;;  %v1383_v8 = vpop.f32.mrf.mxu2 }
 0x43e   :  { %v1235_v61 = vadd.f32 %v1231_v56, %v1198_v17 }
 0x440   :  { %v1272_v58 = vadd.f32 %v1268_v62, %v1235_v61 }
 0x442   :  { %1274 = vst.msk [vmem:[#allocation2 + $0x8] sm:$0xff] %vm86_vm3, %v1272_v58 }
 0x444   :  { %v1309_v24 = vpop.f32.mrf.mxu1 }
 0x445   :  { %v1313_v25 = vadd.f32 %v1309_v24, %v1276_v22 }
 0x44e   :  { %v1343_v6 = vpop.f32.mrf.mxu0 }
 0x44f   :  { %v1349_v9 = vadd.f32 %v1343_v6, %v1312_v5 }
 0x451   :  { %v1386_v27 = vadd.f32 %v1380_v57, %v1349_v9 }
 0x452   :  { %v1417_v7 = vpop.f32.mrf.mxu1 }
 0x453   :  { %v1423_v41 = vadd.f32 %v1417_v7, %v1386_v27 }
 0x455   :  { %1427 = vrot.lane.b32.xlu0 %v1423_v41, %s1656_s6 }
 0x456   :  { %v1346_v18 = vpop.f32.mrf.mxu0 }
 0x457   :  { %v1350_v12 = vadd.f32 %v1346_v18, %v1313_v25 }
 0x459   :  { %v1387_v42 = vadd.f32 %v1383_v8, %v1350_v12 }
 0x45a   :  { %v1420_v14 = vpop.f32.mrf.mxu1 }
 0x45b   :  { %v1424_v19 = vadd.f32 %v1420_v14, %v1387_v42 }
 0x45d   :  { %1429 = vrot.lane.b32.xlu2 %v1424_v19, %s1656_s6 }
 0x4b7   :  { %v1430_v29 = vpop.permute.xlu2 %1429 }
 0x4b8   :  { %1435 = vst.msk [vmem:[#allocation2 + $0x8] sm:$0xff] %vm1433_vm1, %v1430_v29 }
 0x4c7   :  { %v1428_v33 = vpop.permute.xlu0 %1427 }
 0x4c8   :  { %1434 = vst.msk [vmem:[#allocation2] sm:$0xff] %vm1433_vm1, %v1428_v33 }
 0x4c9   :  { %1448 = dma.vmem_to_hbm [thread:$0]  %s1441_s17, 256, %s1443_s18, [#allocation3], %s1658_s20, %s1658_s20, %s1659_s21  }
 0x4ca   :  { %1649 = dma.done.wait [#allocation3], 256  }
 0x4cb   :  { %1650 = vsyncadd [#allocation3], 4294967040 }
 0x4cc   :  { %1453 = vsyncpa [#allocation3], 1 }

</bundles_post_ra>
